<compile_context>
chip_gen: v6e
topology: v6e:2x2x1
jax: 0.10.0
libtpu: 0.0.40
codegen_flags: <defaults>
</compile_context>

<pallas_src>
import functools

import jax
import jax.numpy as jnp
from jax import lax
from jax.experimental import pallas as pl
from jax.experimental.pallas import tpu as pltpu

# ----------------------------- model config (scaled-down BERT) ---------------
VOCAB = 100
MAX_POS = 16
HIDDEN = 32
N_HEADS = 2
HEAD_DIM = HIDDEN // N_HEADS
FFN = 64
N_LAYERS = 2
EMBED_DIM = 16          # TextEncoder fc output dim (256 in original, scaled down)
LN_EPS = 1e-12
_INV_SQRT2 = 0.7071067811865476


# ----------------------------- fused Pallas kernel ----------------------------
def _text_encoder_kernel(
    ids_ref, wemb_ref, postok_ref, emb_g_ref, emb_b_ref,
    wqkv_ref, bqkv_ref, wo_ref, bo_ref, g1_ref, be1_ref,
    w1_ref, b1_ref, w2_ref, b2_ref, g2_ref, be2_ref,
    fcw_ref, fcb_ref, out_ref,
    *, batch, seq, n_layers, n_heads, head_dim, eps):
    rows = batch * seq
    hidden = n_heads * head_dim

    def layer_norm(v, g, b):
        mu = jnp.mean(v, axis=-1, keepdims=True)
        var = jnp.mean((v - mu) * (v - mu), axis=-1, keepdims=True)
        return (v - mu) * lax.rsqrt(var + eps) * g + b

    # ---- embeddings: in-kernel word gather (one-hot matmul) + pos/type + LN ----
    ids = ids_ref[...]                                          # (rows, 1) int32
    pad_vocab = wemb_ref.shape[0]
    onehot = (lax.broadcasted_iota(jnp.int32, (rows, pad_vocab), 1) == ids
              ).astype(jnp.float32)
    x = jnp.dot(onehot, wemb_ref[...], preferred_element_type=jnp.float32)
    x = x + postok_ref[...]                                     # pos + token-type
    h = layer_norm(x, emb_g_ref[...], emb_b_ref[...])           # (rows, hidden)

    scale = 1.0 / float(head_dim) ** 0.5

    for l in range(n_layers):                                   # static unroll
        # fused QKV projection: one MXU matmul, lane-dense N = 3*hidden output
        qkv = (jnp.dot(h, wqkv_ref[l], preferred_element_type=jnp.float32)
               + bqkv_ref[l])                                   # (rows, 3*hidden)

        # per-head attention; heads sliced statically on the lane axis,
        # batches handled by a batched dot_general (no k.T materialized)
        ctx_heads = []
        for hd in range(n_heads):
            lo = hd * head_dim
            q = qkv[:, lo:lo + head_dim].reshape(batch, seq, head_dim)
            k = qkv[:, hidden + lo:hidden + lo + head_dim].reshape(
                batch, seq, head_dim)
            v = qkv[:, 2 * hidden + lo:2 * hidden + lo + head_dim].reshape(
                batch, seq, head_dim)
            s = jnp.einsum("bqd,bkd->bqk", q, k,
                           preferred_element_type=jnp.float32) * scale
            m = jnp.max(s, axis=-1, keepdims=True)
            p = jnp.exp(s - m)
            p = p / jnp.sum(p, axis=-1, keepdims=True)
            ctx_heads.append(
                jnp.einsum("bqk,bkd->bqd", p, v,
                           preferred_element_type=jnp.float32
                           ).reshape(rows, head_dim))
        ctx = jnp.concatenate(ctx_heads, axis=-1)               # (rows, hidden)

        attn = (jnp.dot(ctx, wo_ref[l], preferred_element_type=jnp.float32)
                + bo_ref[l])
        h = layer_norm(attn + h, g1_ref[l], be1_ref[l])

        if l == n_layers - 1:
            # only hidden[:, 0, :] is consumed downstream -> restrict the rest
            # of the last layer (FFN + LN2) and the fc head to the [CLS] rows.
            h = jnp.concatenate(
                [h[b * seq:b * seq + 1, :] for b in range(batch)], axis=0)

        ff = (jnp.dot(h, w1_ref[l], preferred_element_type=jnp.float32)
              + b1_ref[l])
        ff = 0.5 * ff * (1.0 + lax.erf(ff * _INV_SQRT2))        # exact (erf) GELU
        ff = (jnp.dot(ff, w2_ref[l], preferred_element_type=jnp.float32)
              + b2_ref[l])
        h = layer_norm(ff + h, g2_ref[l], be2_ref[l])

    out_ref[...] = (jnp.dot(h, fcw_ref[...], preferred_element_type=jnp.float32)
                    + fcb_ref[...])                             # (batch, EMBED_DIM)


def _full_spec(shape):
    nd = len(shape)
    return pl.BlockSpec(shape, lambda *_: (0,) * nd)


@jax.jit
def text_encoder_forward(token_ids, params):
    # TODO(synk): BertTokenizer (string -> ids, padding/truncation) has no Pallas
    # equivalent; the kernel consumes integer token ids with [CLS] at position 0.
    B, S = token_ids.shape
    rows = B * S
    n_layers = len(params["layers"])

    # --- weight-only packing (constant-folded under jit; no activation traffic) ---
    pad_vocab = ((VOCAB + 127) // 128) * 128
    wemb = jnp.pad(params["word_emb"], ((0, pad_vocab - VOCAB), (0, 0)))
    postok = jnp.tile(
        params["pos_emb"][:S] + params["tok_type_emb"][0][None, :], (B, 1))

    def stack(fn):
        return jnp.stack([fn(layer) for layer in params["layers"]])

    wqkv = stack(lambda l: jnp.concatenate([l["wq"], l["wk"], l["wv"]], axis=1))
    bqkv = stack(lambda l: jnp.concatenate([l["bq"], l["bk"], l["bv"]])[None, :])
    wo = stack(lambda l: l["wo"])
    bo = stack(lambda l: l["bo"][None, :])
    g1 = stack(lambda l: l["ln1_g"][None, :])
    be1 = stack(lambda l: l["ln1_b"][None, :])
    w1 = stack(lambda l: l["w1"])
    b1 = stack(lambda l: l["b1"][None, :])
    w2 = stack(lambda l: l["w2"])
    b2 = stack(lambda l: l["b2"][None, :])
    g2 = stack(lambda l: l["ln2_g"][None, :])
    be2 = stack(lambda l: l["ln2_b"][None, :])

    args = (
        token_ids.reshape(rows, 1).astype(jnp.int32),
        wemb, postok,
        params["emb_ln_g"][None, :], params["emb_ln_b"][None, :],
        wqkv, bqkv, wo, bo, g1, be1, w1, b1, w2, b2, g2, be2,
        params["fc_w"], params["fc_b"][None, :],
    )

    kernel = functools.partial(
        _text_encoder_kernel, batch=B, seq=S, n_layers=n_layers,
        n_heads=N_HEADS, head_dim=HEAD_DIM, eps=LN_EPS)

    return pl.pallas_call(
        kernel,
        out_shape=jax.ShapeDtypeStruct((B, EMBED_DIM), jnp.float32),
        in_specs=[_full_spec(a.shape) for a in args],
        out_specs=_full_spec((B, EMBED_DIM)),
        compiler_params=pltpu.CompilerParams(vmem_limit_bytes=32 * 1024 * 1024),
    )(*args)


# ----------------------------- parameters (deterministic) --------------------
def init_params(key):
    ks = jax.random.split(key, 4 + N_LAYERS)

    def nrm(k, shape, scale=0.02):
        return scale * jax.random.normal(k, shape, dtype=jnp.float32)

    params = {
        "word_emb": nrm(ks[0], (VOCAB, HIDDEN)),
        "pos_emb": nrm(ks[1], (MAX_POS, HIDDEN)),
        "tok_type_emb": nrm(ks[2], (2, HIDDEN)),
        "emb_ln_g": jnp.ones((HIDDEN,), jnp.float32),
        "emb_ln_b": jnp.zeros((HIDDEN,), jnp.float32),
        "fc_w": nrm(ks[3], (HIDDEN, EMBED_DIM), scale=0.05),
        "fc_b": jnp.zeros((EMBED_DIM,), jnp.float32),
        "layers": [],
    }
    for i in range(N_LAYERS):
        lk = jax.random.split(ks[4 + i] if 4 + i < len(ks)
                              else jax.random.fold_in(key, i), 6)
        layer = {
            "wq": nrm(lk[0], (HIDDEN, HIDDEN)), "bq": jnp.zeros((HIDDEN,), jnp.float32),
            "wk": nrm(lk[1], (HIDDEN, HIDDEN)), "bk": jnp.zeros((HIDDEN,), jnp.float32),
            "wv": nrm(lk[2], (HIDDEN, HIDDEN)), "bv": jnp.zeros((HIDDEN,), jnp.float32),
            "wo": nrm(lk[3], (HIDDEN, HIDDEN)), "bo": jnp.zeros((HIDDEN,), jnp.float32),
            "ln1_g": jnp.ones((HIDDEN,), jnp.float32),
            "ln1_b": jnp.zeros((HIDDEN,), jnp.float32),
            "w1": nrm(lk[4], (HIDDEN, FFN)), "b1": jnp.zeros((FFN,), jnp.float32),
            "w2": nrm(lk[5], (FFN, HIDDEN)), "b2": jnp.zeros((HIDDEN,), jnp.float32),
            "ln2_g": jnp.ones((HIDDEN,), jnp.float32),
            "ln2_b": jnp.zeros((HIDDEN,), jnp.float32),
        }
        params["layers"].append(layer)
    return params


# ----------------------------- main -------------------------------------------
if __name__ == "__main__":
    key = jax.random.PRNGKey(0)
    pkey, tkey = jax.random.split(key)
    params = init_params(pkey)

    B, S = 2, 8
    token_ids = jax.random.randint(tkey, (B, S), 1, VOCAB)
    token_ids = token_ids.at[:, 0].set(0)           # [CLS] id at position 0

    out = text_encoder_forward(token_ids, params)
    out = jax.block_until_ready(out)
    assert out.shape == (B, EMBED_DIM) and out.dtype == jnp.float32
    assert bool(jnp.all(jnp.isfinite(out)))
    print("KERNEL_OK")
</pallas_src>

<mosaic_0001>
module attributes {stable_mosaic.version = 11 : i64} {
  func.func @_text_encoder_kernel(%arg0: memref<16x1xi32, #tpu.memory_space<vmem>>, %arg1: memref<128x32xf32, #tpu.memory_space<vmem>>, %arg2: memref<16x32xf32, #tpu.memory_space<vmem>>, %arg3: memref<1x32xf32, #tpu.memory_space<vmem>>, %arg4: memref<1x32xf32, #tpu.memory_space<vmem>>, %arg5: memref<2x32x96xf32, #tpu.memory_space<vmem>>, %arg6: memref<2x1x96xf32, #tpu.memory_space<vmem>>, %arg7: memref<2x32x32xf32, #tpu.memory_space<vmem>>, %arg8: memref<2x1x32xf32, #tpu.memory_space<vmem>>, %arg9: memref<2x1x32xf32, #tpu.memory_space<vmem>>, %arg10: memref<2x1x32xf32, #tpu.memory_space<vmem>>, %arg11: memref<2x32x64xf32, #tpu.memory_space<vmem>>, %arg12: memref<2x1x64xf32, #tpu.memory_space<vmem>>, %arg13: memref<2x64x32xf32, #tpu.memory_space<vmem>>, %arg14: memref<2x1x32xf32, #tpu.memory_space<vmem>>, %arg15: memref<2x1x32xf32, #tpu.memory_space<vmem>>, %arg16: memref<2x1x32xf32, #tpu.memory_space<vmem>>, %arg17: memref<32x16xf32, #tpu.memory_space<vmem>>, %arg18: memref<1x16xf32, #tpu.memory_space<vmem>>, %arg19: memref<2x16xf32, #tpu.memory_space<vmem>>) attributes {dimension_semantics = [], scalar_prefetch = 0 : i64, scratch_operands = 0 : i64, tpu.core_type = #tpu.core_type<tc>} {
    %c0 = arith.constant 0 : index
    %c0_0 = arith.constant 0 : index
    %0 = vector.load %arg0[%c0, %c0_0] : memref<16x1xi32, #tpu.memory_space<vmem>>, vector<16x1xi32>
    %1 = tpu.iota {dimensions = array<i32: 1>} : vector<16x128xi32>
    %2 = vector.broadcast %0 : vector<16x1xi32> to vector<16x128xi32>
    %3 = arith.cmpi eq, %1, %2 : vector<16x128xi32>
    %4 = arith.extui %3 : vector<16x128xi1> to vector<16x128xi32>
    %5 = arith.sitofp %4 : vector<16x128xi32> to vector<16x128xf32>
    %c0_1 = arith.constant 0 : index
    %c0_2 = arith.constant 0 : index
    %6 = vector.load %arg1[%c0_1, %c0_2] : memref<128x32xf32, #tpu.memory_space<vmem>>, vector<128x32xf32>
    %cst = arith.constant dense<0.000000e+00> : vector<16x32xf32>
    %7 = tpu.matmul %5, %6, %cst {dimension_numbers = #tpu.dot_dimension_numbers<[1], [0], [0], [1], [0, 0, 1, 1], [], []>} : vector<16x128xf32>, vector<128x32xf32>, vector<16x32xf32> -> vector<16x32xf32>
    %c0_3 = arith.constant 0 : index
    %c0_4 = arith.constant 0 : index
    %8 = vector.load %arg2[%c0_3, %c0_4] : memref<16x32xf32, #tpu.memory_space<vmem>>, vector<16x32xf32>
    %9 = arith.addf %7, %8 : vector<16x32xf32>
    %c0_5 = arith.constant 0 : index
    %c0_6 = arith.constant 0 : index
    %10 = vector.load %arg3[%c0_5, %c0_6] : memref<1x32xf32, #tpu.memory_space<vmem>>, vector<1x32xf32>
    %c0_7 = arith.constant 0 : index
    %c0_8 = arith.constant 0 : index
    %11 = vector.load %arg4[%c0_7, %c0_8] : memref<1x32xf32, #tpu.memory_space<vmem>>, vector<1x32xf32>
    %cst_9 = arith.constant dense<0.000000e+00> : vector<16xf32>
    %12 = vector.multi_reduction <add>, %9, %cst_9 [1] : vector<16x32xf32> to vector<16xf32>
    %13 = vector.shape_cast %12 : vector<16xf32> to vector<16x1xf32>
    %cst_10 = arith.constant 3.200000e+01 : f32
    %14 = vector.broadcast %cst_10 : f32 to vector<16x1xf32>
    %15 = arith.divf %13, %14 : vector<16x1xf32>
    %16 = vector.broadcast %15 : vector<16x1xf32> to vector<16x32xf32>
    %17 = arith.subf %9, %16 : vector<16x32xf32>
    %18 = vector.broadcast %15 : vector<16x1xf32> to vector<16x32xf32>
    %19 = arith.subf %9, %18 : vector<16x32xf32>
    %20 = arith.mulf %17, %19 : vector<16x32xf32>
    %cst_11 = arith.constant dense<0.000000e+00> : vector<16xf32>
    %21 = vector.multi_reduction <add>, %20, %cst_11 [1] : vector<16x32xf32> to vector<16xf32>
    %22 = vector.shape_cast %21 : vector<16xf32> to vector<16x1xf32>
    %cst_12 = arith.constant 3.200000e+01 : f32
    %23 = vector.broadcast %cst_12 : f32 to vector<16x1xf32>
    %24 = arith.divf %22, %23 : vector<16x1xf32>
    %25 = vector.broadcast %15 : vector<16x1xf32> to vector<16x32xf32>
    %26 = arith.subf %9, %25 : vector<16x32xf32>
    %cst_13 = arith.constant 9.99999996E-13 : f32
    %27 = vector.broadcast %cst_13 : f32 to vector<16x1xf32>
    %28 = arith.addf %24, %27 : vector<16x1xf32>
    %29 = math.rsqrt %28 : vector<16x1xf32>
    %30 = vector.broadcast %29 : vector<16x1xf32> to vector<16x32xf32>
    %31 = arith.mulf %26, %30 : vector<16x32xf32>
    %32 = vector.broadcast %10 : vector<1x32xf32> to vector<16x32xf32>
    %33 = arith.mulf %31, %32 : vector<16x32xf32>
    %34 = vector.broadcast %11 : vector<1x32xf32> to vector<16x32xf32>
    %35 = arith.addf %33, %34 : vector<16x32xf32>
    %c0_14 = arith.constant 0 : index
    %c0_15 = arith.constant 0 : index
    %c0_16 = arith.constant 0 : index
    %36 = vector.load %arg5[%c0_14, %c0_15, %c0_16] : memref<2x32x96xf32, #tpu.memory_space<vmem>>, vector<1x32x96xf32>
    %37 = vector.shape_cast %36 : vector<1x32x96xf32> to vector<32x96xf32>
    %cst_17 = arith.constant dense<0.000000e+00> : vector<16x96xf32>
    %38 = tpu.matmul %35, %37, %cst_17 {dimension_numbers = #tpu.dot_dimension_numbers<[1], [0], [0], [1], [0, 0, 1, 1], [], []>} : vector<16x32xf32>, vector<32x96xf32>, vector<16x96xf32> -> vector<16x96xf32>
    %c0_18 = arith.constant 0 : index
    %c0_19 = arith.constant 0 : index
    %c0_20 = arith.constant 0 : index
    %39 = vector.load %arg6[%c0_18, %c0_19, %c0_20] : memref<2x1x96xf32, #tpu.memory_space<vmem>>, vector<1x1x96xf32>
    %40 = vector.shape_cast %39 : vector<1x1x96xf32> to vector<1x96xf32>
    %41 = vector.broadcast %40 : vector<1x96xf32> to vector<16x96xf32>
    %42 = arith.addf %38, %41 : vector<16x96xf32>
    %43 = vector.extract_strided_slice %42 {offsets = [0, 0], sizes = [16, 16], strides = [1, 1]} : vector<16x96xf32> to vector<16x16xf32>
    %44 = vector.shape_cast %43 : vector<16x16xf32> to vector<2x8x16xf32>
    %45 = vector.extract_strided_slice %42 {offsets = [0, 32], sizes = [16, 16], strides = [1, 1]} : vector<16x96xf32> to vector<16x16xf32>
    %46 = vector.shape_cast %45 : vector<16x16xf32> to vector<2x8x16xf32>
    %47 = vector.extract_strided_slice %42 {offsets = [0, 64], sizes = [16, 16], strides = [1, 1]} : vector<16x96xf32> to vector<16x16xf32>
    %48 = vector.shape_cast %47 : vector<16x16xf32> to vector<2x8x16xf32>
    "tpu.trace_start"() <{level = 10 : i32, message = "bqd,bkd->bqk"}> : () -> ()
    %cst_21 = arith.constant dense<0.000000e+00> : vector<2x8x8xf32>
    %49 = tpu.matmul %44, %46, %cst_21 {dimension_numbers = #tpu.dot_dimension_numbers<[2], [2], [1], [1], [0, 0, 0, 1, 1, 1], [0], [0]>} : vector<2x8x16xf32>, vector<2x8x16xf32>, vector<2x8x8xf32> -> vector<2x8x8xf32>
    "tpu.trace_stop"() : () -> ()
    %cst_22 = arith.constant 2.500000e-01 : f32
    %50 = vector.broadcast %cst_22 : f32 to vector<2x8x8xf32>
    %51 = arith.mulf %49, %50 : vector<2x8x8xf32>
    %cst_23 = arith.constant dense<0xFF800000> : vector<2x8xf32>
    %52 = vector.multi_reduction <maximumf>, %51, %cst_23 [2] : vector<2x8x8xf32> to vector<2x8xf32>
    %53 = vector.shape_cast %52 : vector<2x8xf32> to vector<2x8x1xf32>
    %54 = vector.broadcast %53 : vector<2x8x1xf32> to vector<2x8x8xf32>
    %55 = arith.subf %51, %54 : vector<2x8x8xf32>
    %56 = math.exp %55 : vector<2x8x8xf32>
    %cst_24 = arith.constant dense<0.000000e+00> : vector<2x8xf32>
    %57 = vector.multi_reduction <add>, %56, %cst_24 [2] : vector<2x8x8xf32> to vector<2x8xf32>
    %58 = vector.shape_cast %57 : vector<2x8xf32> to vector<2x8x1xf32>
    %59 = vector.broadcast %58 : vector<2x8x1xf32> to vector<2x8x8xf32>
    %60 = arith.divf %56, %59 : vector<2x8x8xf32>
    "tpu.trace_start"() <{level = 10 : i32, message = "bqk,bkd->bqd"}> : () -> ()
    %cst_25 = arith.constant dense<0.000000e+00> : vector<2x8x16xf32>
    %61 = tpu.matmul %60, %48, %cst_25 {dimension_numbers = #tpu.dot_dimension_numbers<[2], [1], [1], [2], [0, 0, 0, 1, 1, 2], [0], [0]>} : vector<2x8x8xf32>, vector<2x8x16xf32>, vector<2x8x16xf32> -> vector<2x8x16xf32>
    "tpu.trace_stop"() : () -> ()
    %62 = vector.shape_cast %61 : vector<2x8x16xf32> to vector<16x16xf32>
    %63 = vector.extract_strided_slice %42 {offsets = [0, 16], sizes = [16, 16], strides = [1, 1]} : vector<16x96xf32> to vector<16x16xf32>
    %64 = vector.shape_cast %63 : vector<16x16xf32> to vector<2x8x16xf32>
    %65 = vector.extract_strided_slice %42 {offsets = [0, 48], sizes = [16, 16], strides = [1, 1]} : vector<16x96xf32> to vector<16x16xf32>
    %66 = vector.shape_cast %65 : vector<16x16xf32> to vector<2x8x16xf32>
    %67 = vector.extract_strided_slice %42 {offsets = [0, 80], sizes = [16, 16], strides = [1, 1]} : vector<16x96xf32> to vector<16x16xf32>
    %68 = vector.shape_cast %67 : vector<16x16xf32> to vector<2x8x16xf32>
    "tpu.trace_start"() <{level = 10 : i32, message = "bqd,bkd->bqk"}> : () -> ()
    %cst_26 = arith.constant dense<0.000000e+00> : vector<2x8x8xf32>
    %69 = tpu.matmul %64, %66, %cst_26 {dimension_numbers = #tpu.dot_dimension_numbers<[2], [2], [1], [1], [0, 0, 0, 1, 1, 1], [0], [0]>} : vector<2x8x16xf32>, vector<2x8x16xf32>, vector<2x8x8xf32> -> vector<2x8x8xf32>
    "tpu.trace_stop"() : () -> ()
    %cst_27 = arith.constant 2.500000e-01 : f32
    %70 = vector.broadcast %cst_27 : f32 to vector<2x8x8xf32>
    %71 = arith.mulf %69, %70 : vector<2x8x8xf32>
    %cst_28 = arith.constant dense<0xFF800000> : vector<2x8xf32>
    %72 = vector.multi_reduction <maximumf>, %71, %cst_28 [2] : vector<2x8x8xf32> to vector<2x8xf32>
    %73 = vector.shape_cast %72 : vector<2x8xf32> to vector<2x8x1xf32>
    %74 = vector.broadcast %73 : vector<2x8x1xf32> to vector<2x8x8xf32>
    %75 = arith.subf %71, %74 : vector<2x8x8xf32>
    %76 = math.exp %75 : vector<2x8x8xf32>
    %cst_29 = arith.constant dense<0.000000e+00> : vector<2x8xf32>
    %77 = vector.multi_reduction <add>, %76, %cst_29 [2] : vector<2x8x8xf32> to vector<2x8xf32>
    %78 = vector.shape_cast %77 : vector<2x8xf32> to vector<2x8x1xf32>
    %79 = vector.broadcast %78 : vector<2x8x1xf32> to vector<2x8x8xf32>
    %80 = arith.divf %76, %79 : vector<2x8x8xf32>
    "tpu.trace_start"() <{level = 10 : i32, message = "bqk,bkd->bqd"}> : () -> ()
    %cst_30 = arith.constant dense<0.000000e+00> : vector<2x8x16xf32>
    %81 = tpu.matmul %80, %68, %cst_30 {dimension_numbers = #tpu.dot_dimension_numbers<[2], [1], [1], [2], [0, 0, 0, 1, 1, 2], [0], [0]>} : vector<2x8x8xf32>, vector<2x8x16xf32>, vector<2x8x16xf32> -> vector<2x8x16xf32>
    "tpu.trace_stop"() : () -> ()
    %82 = vector.shape_cast %81 : vector<2x8x16xf32> to vector<16x16xf32>
    %83 = tpu.concatenate %62, %82 in 1 : vector<16x16xf32>, vector<16x16xf32> -> vector<16x32xf32>
    %c0_31 = arith.constant 0 : index
    %c0_32 = arith.constant 0 : index
    %c0_33 = arith.constant 0 : index
    %84 = vector.load %arg7[%c0_31, %c0_32, %c0_33] : memref<2x32x32xf32, #tpu.memory_space<vmem>>, vector<1x32x32xf32>
    %85 = vector.shape_cast %84 : vector<1x32x32xf32> to vector<32x32xf32>
    %cst_34 = arith.constant dense<0.000000e+00> : vector<16x32xf32>
    %86 = tpu.matmul %83, %85, %cst_34 {dimension_numbers = #tpu.dot_dimension_numbers<[1], [0], [0], [1], [0, 0, 1, 1], [], []>} : vector<16x32xf32>, vector<32x32xf32>, vector<16x32xf32> -> vector<16x32xf32>
    %c0_35 = arith.constant 0 : index
    %c0_36 = arith.constant 0 : index
    %c0_37 = arith.constant 0 : index
    %87 = vector.load %arg8[%c0_35, %c0_36, %c0_37] : memref<2x1x32xf32, #tpu.memory_space<vmem>>, vector<1x1x32xf32>
    %88 = vector.shape_cast %87 : vector<1x1x32xf32> to vector<1x32xf32>
    %89 = vector.broadcast %88 : vector<1x32xf32> to vector<16x32xf32>
    %90 = arith.addf %86, %89 : vector<16x32xf32>
    %91 = arith.addf %90, %35 : vector<16x32xf32>
    %c0_38 = arith.constant 0 : index
    %c0_39 = arith.constant 0 : index
    %c0_40 = arith.constant 0 : index
    %92 = vector.load %arg9[%c0_38, %c0_39, %c0_40] : memref<2x1x32xf32, #tpu.memory_space<vmem>>, vector<1x1x32xf32>
    %93 = vector.shape_cast %92 : vector<1x1x32xf32> to vector<1x32xf32>
    %c0_41 = arith.constant 0 : index
    %c0_42 = arith.constant 0 : index
    %c0_43 = arith.constant 0 : index
    %94 = vector.load %arg10[%c0_41, %c0_42, %c0_43] : memref<2x1x32xf32, #tpu.memory_space<vmem>>, vector<1x1x32xf32>
    %95 = vector.shape_cast %94 : vector<1x1x32xf32> to vector<1x32xf32>
    %cst_44 = arith.constant dense<0.000000e+00> : vector<16xf32>
    %96 = vector.multi_reduction <add>, %91, %cst_44 [1] : vector<16x32xf32> to vector<16xf32>
    %97 = vector.shape_cast %96 : vector<16xf32> to vector<16x1xf32>
    %cst_45 = arith.constant 3.200000e+01 : f32
    %98 = vector.broadcast %cst_45 : f32 to vector<16x1xf32>
    %99 = arith.divf %97, %98 : vector<16x1xf32>
    %100 = vector.broadcast %99 : vector<16x1xf32> to vector<16x32xf32>
    %101 = arith.subf %91, %100 : vector<16x32xf32>
    %102 = vector.broadcast %99 : vector<16x1xf32> to vector<16x32xf32>
    %103 = arith.subf %91, %102 : vector<16x32xf32>
    %104 = arith.mulf %101, %103 : vector<16x32xf32>
    %cst_46 = arith.constant dense<0.000000e+00> : vector<16xf32>
    %105 = vector.multi_reduction <add>, %104, %cst_46 [1] : vector<16x32xf32> to vector<16xf32>
    %106 = vector.shape_cast %105 : vector<16xf32> to vector<16x1xf32>
    %cst_47 = arith.constant 3.200000e+01 : f32
    %107 = vector.broadcast %cst_47 : f32 to vector<16x1xf32>
    %108 = arith.divf %106, %107 : vector<16x1xf32>
    %109 = vector.broadcast %99 : vector<16x1xf32> to vector<16x32xf32>
    %110 = arith.subf %91, %109 : vector<16x32xf32>
    %cst_48 = arith.constant 9.99999996E-13 : f32
    %111 = vector.broadcast %cst_48 : f32 to vector<16x1xf32>
    %112 = arith.addf %108, %111 : vector<16x1xf32>
    %113 = math.rsqrt %112 : vector<16x1xf32>
    %114 = vector.broadcast %113 : vector<16x1xf32> to vector<16x32xf32>
    %115 = arith.mulf %110, %114 : vector<16x32xf32>
    %116 = vector.broadcast %93 : vector<1x32xf32> to vector<16x32xf32>
    %117 = arith.mulf %115, %116 : vector<16x32xf32>
    %118 = vector.broadcast %95 : vector<1x32xf32> to vector<16x32xf32>
    %119 = arith.addf %117, %118 : vector<16x32xf32>
    %c0_49 = arith.constant 0 : index
    %c0_50 = arith.constant 0 : index
    %c0_51 = arith.constant 0 : index
    %120 = vector.load %arg11[%c0_49, %c0_50, %c0_51] : memref<2x32x64xf32, #tpu.memory_space<vmem>>, vector<1x32x64xf32>
    %121 = vector.shape_cast %120 : vector<1x32x64xf32> to vector<32x64xf32>
    %cst_52 = arith.constant dense<0.000000e+00> : vector<16x64xf32>
    %122 = tpu.matmul %119, %121, %cst_52 {dimension_numbers = #tpu.dot_dimension_numbers<[1], [0], [0], [1], [0, 0, 1, 1], [], []>} : vector<16x32xf32>, vector<32x64xf32>, vector<16x64xf32> -> vector<16x64xf32>
    %c0_53 = arith.constant 0 : index
    %c0_54 = arith.constant 0 : index
    %c0_55 = arith.constant 0 : index
    %123 = vector.load %arg12[%c0_53, %c0_54, %c0_55] : memref<2x1x64xf32, #tpu.memory_space<vmem>>, vector<1x1x64xf32>
    %124 = vector.shape_cast %123 : vector<1x1x64xf32> to vector<1x64xf32>
    %125 = vector.broadcast %124 : vector<1x64xf32> to vector<16x64xf32>
    %126 = arith.addf %122, %125 : vector<16x64xf32>
    %cst_56 = arith.constant 5.000000e-01 : f32
    %127 = vector.broadcast %cst_56 : f32 to vector<16x64xf32>
    %128 = arith.mulf %127, %126 : vector<16x64xf32>
    %cst_57 = arith.constant 0.707106769 : f32
    %129 = vector.broadcast %cst_57 : f32 to vector<16x64xf32>
    %130 = arith.mulf %126, %129 : vector<16x64xf32>
    %131 = math.erf %130 : vector<16x64xf32>
    %cst_58 = arith.constant 1.000000e+00 : f32
    %132 = vector.broadcast %cst_58 : f32 to vector<16x64xf32>
    %133 = arith.addf %132, %131 : vector<16x64xf32>
    %134 = arith.mulf %128, %133 : vector<16x64xf32>
    %c0_59 = arith.constant 0 : index
    %c0_60 = arith.constant 0 : index
    %c0_61 = arith.constant 0 : index
    %135 = vector.load %arg13[%c0_59, %c0_60, %c0_61] : memref<2x64x32xf32, #tpu.memory_space<vmem>>, vector<1x64x32xf32>
    %136 = vector.shape_cast %135 : vector<1x64x32xf32> to vector<64x32xf32>
    %cst_62 = arith.constant dense<0.000000e+00> : vector<16x32xf32>
    %137 = tpu.matmul %134, %136, %cst_62 {dimension_numbers = #tpu.dot_dimension_numbers<[1], [0], [0], [1], [0, 0, 1, 1], [], []>} : vector<16x64xf32>, vector<64x32xf32>, vector<16x32xf32> -> vector<16x32xf32>
    %c0_63 = arith.constant 0 : index
    %c0_64 = arith.constant 0 : index
    %c0_65 = arith.constant 0 : index
    %138 = vector.load %arg14[%c0_63, %c0_64, %c0_65] : memref<2x1x32xf32, #tpu.memory_space<vmem>>, vector<1x1x32xf32>
    %139 = vector.shape_cast %138 : vector<1x1x32xf32> to vector<1x32xf32>
    %140 = vector.broadcast %139 : vector<1x32xf32> to vector<16x32xf32>
    %141 = arith.addf %137, %140 : vector<16x32xf32>
    %142 = arith.addf %141, %119 : vector<16x32xf32>
    %c0_66 = arith.constant 0 : index
    %c0_67 = arith.constant 0 : index
    %c0_68 = arith.constant 0 : index
    %143 = vector.load %arg15[%c0_66, %c0_67, %c0_68] : memref<2x1x32xf32, #tpu.memory_space<vmem>>, vector<1x1x32xf32>
    %144 = vector.shape_cast %143 : vector<1x1x32xf32> to vector<1x32xf32>
    %c0_69 = arith.constant 0 : index
    %c0_70 = arith.constant 0 : index
    %c0_71 = arith.constant 0 : index
    %145 = vector.load %arg16[%c0_69, %c0_70, %c0_71] : memref<2x1x32xf32, #tpu.memory_space<vmem>>, vector<1x1x32xf32>
    %146 = vector.shape_cast %145 : vector<1x1x32xf32> to vector<1x32xf32>
    %cst_72 = arith.constant dense<0.000000e+00> : vector<16xf32>
    %147 = vector.multi_reduction <add>, %142, %cst_72 [1] : vector<16x32xf32> to vector<16xf32>
    %148 = vector.shape_cast %147 : vector<16xf32> to vector<16x1xf32>
    %cst_73 = arith.constant 3.200000e+01 : f32
    %149 = vector.broadcast %cst_73 : f32 to vector<16x1xf32>
    %150 = arith.divf %148, %149 : vector<16x1xf32>
    %151 = vector.broadcast %150 : vector<16x1xf32> to vector<16x32xf32>
    %152 = arith.subf %142, %151 : vector<16x32xf32>
    %153 = vector.broadcast %150 : vector<16x1xf32> to vector<16x32xf32>
    %154 = arith.subf %142, %153 : vector<16x32xf32>
    %155 = arith.mulf %152, %154 : vector<16x32xf32>
    %cst_74 = arith.constant dense<0.000000e+00> : vector<16xf32>
    %156 = vector.multi_reduction <add>, %155, %cst_74 [1] : vector<16x32xf32> to vector<16xf32>
    %157 = vector.shape_cast %156 : vector<16xf32> to vector<16x1xf32>
    %cst_75 = arith.constant 3.200000e+01 : f32
    %158 = vector.broadcast %cst_75 : f32 to vector<16x1xf32>
    %159 = arith.divf %157, %158 : vector<16x1xf32>
    %160 = vector.broadcast %150 : vector<16x1xf32> to vector<16x32xf32>
    %161 = arith.subf %142, %160 : vector<16x32xf32>
    %cst_76 = arith.constant 9.99999996E-13 : f32
    %162 = vector.broadcast %cst_76 : f32 to vector<16x1xf32>
    %163 = arith.addf %159, %162 : vector<16x1xf32>
    %164 = math.rsqrt %163 : vector<16x1xf32>
    %165 = vector.broadcast %164 : vector<16x1xf32> to vector<16x32xf32>
    %166 = arith.mulf %161, %165 : vector<16x32xf32>
    %167 = vector.broadcast %144 : vector<1x32xf32> to vector<16x32xf32>
    %168 = arith.mulf %166, %167 : vector<16x32xf32>
    %169 = vector.broadcast %146 : vector<1x32xf32> to vector<16x32xf32>
    %170 = arith.addf %168, %169 : vector<16x32xf32>
    %c1 = arith.constant 1 : index
    %c0_77 = arith.constant 0 : index
    %c0_78 = arith.constant 0 : index
    %171 = vector.load %arg5[%c1, %c0_77, %c0_78] : memref<2x32x96xf32, #tpu.memory_space<vmem>>, vector<1x32x96xf32>
    %172 = vector.shape_cast %171 : vector<1x32x96xf32> to vector<32x96xf32>
    %cst_79 = arith.constant dense<0.000000e+00> : vector<16x96xf32>
    %173 = tpu.matmul %170, %172, %cst_79 {dimension_numbers = #tpu.dot_dimension_numbers<[1], [0], [0], [1], [0, 0, 1, 1], [], []>} : vector<16x32xf32>, vector<32x96xf32>, vector<16x96xf32> -> vector<16x96xf32>
    %c1_80 = arith.constant 1 : index
    %c0_81 = arith.constant 0 : index
    %c0_82 = arith.constant 0 : index
    %174 = vector.load %arg6[%c1_80, %c0_81, %c0_82] : memref<2x1x96xf32, #tpu.memory_space<vmem>>, vector<1x1x96xf32>
    %175 = vector.shape_cast %174 : vector<1x1x96xf32> to vector<1x96xf32>
    %176 = vector.broadcast %175 : vector<1x96xf32> to vector<16x96xf32>
    %177 = arith.addf %173, %176 : vector<16x96xf32>
    %178 = vector.extract_strided_slice %177 {offsets = [0, 0], sizes = [16, 16], strides = [1, 1]} : vector<16x96xf32> to vector<16x16xf32>
    %179 = vector.shape_cast %178 : vector<16x16xf32> to vector<2x8x16xf32>
    %180 = vector.extract_strided_slice %177 {offsets = [0, 32], sizes = [16, 16], strides = [1, 1]} : vector<16x96xf32> to vector<16x16xf32>
    %181 = vector.shape_cast %180 : vector<16x16xf32> to vector<2x8x16xf32>
    %182 = vector.extract_strided_slice %177 {offsets = [0, 64], sizes = [16, 16], strides = [1, 1]} : vector<16x96xf32> to vector<16x16xf32>
    %183 = vector.shape_cast %182 : vector<16x16xf32> to vector<2x8x16xf32>
    "tpu.trace_start"() <{level = 10 : i32, message = "bqd,bkd->bqk"}> : () -> ()
    %cst_83 = arith.constant dense<0.000000e+00> : vector<2x8x8xf32>
    %184 = tpu.matmul %179, %181, %cst_83 {dimension_numbers = #tpu.dot_dimension_numbers<[2], [2], [1], [1], [0, 0, 0, 1, 1, 1], [0], [0]>} : vector<2x8x16xf32>, vector<2x8x16xf32>, vector<2x8x8xf32> -> vector<2x8x8xf32>
    "tpu.trace_stop"() : () -> ()
    %cst_84 = arith.constant 2.500000e-01 : f32
    %185 = vector.broadcast %cst_84 : f32 to vector<2x8x8xf32>
    %186 = arith.mulf %184, %185 : vector<2x8x8xf32>
    %cst_85 = arith.constant dense<0xFF800000> : vector<2x8xf32>
    %187 = vector.multi_reduction <maximumf>, %186, %cst_85 [2] : vector<2x8x8xf32> to vector<2x8xf32>
    %188 = vector.shape_cast %187 : vector<2x8xf32> to vector<2x8x1xf32>
    %189 = vector.broadcast %188 : vector<2x8x1xf32> to vector<2x8x8xf32>
    %190 = arith.subf %186, %189 : vector<2x8x8xf32>
    %191 = math.exp %190 : vector<2x8x8xf32>
    %cst_86 = arith.constant dense<0.000000e+00> : vector<2x8xf32>
    %192 = vector.multi_reduction <add>, %191, %cst_86 [2] : vector<2x8x8xf32> to vector<2x8xf32>
    %193 = vector.shape_cast %192 : vector<2x8xf32> to vector<2x8x1xf32>
    %194 = vector.broadcast %193 : vector<2x8x1xf32> to vector<2x8x8xf32>
    %195 = arith.divf %191, %194 : vector<2x8x8xf32>
    "tpu.trace_start"() <{level = 10 : i32, message = "bqk,bkd->bqd"}> : () -> ()
    %cst_87 = arith.constant dense<0.000000e+00> : vector<2x8x16xf32>
    %196 = tpu.matmul %195, %183, %cst_87 {dimension_numbers = #tpu.dot_dimension_numbers<[2], [1], [1], [2], [0, 0, 0, 1, 1, 2], [0], [0]>} : vector<2x8x8xf32>, vector<2x8x16xf32>, vector<2x8x16xf32> -> vector<2x8x16xf32>
    "tpu.trace_stop"() : () -> ()
    %197 = vector.shape_cast %196 : vector<2x8x16xf32> to vector<16x16xf32>
    %198 = vector.extract_strided_slice %177 {offsets = [0, 16], sizes = [16, 16], strides = [1, 1]} : vector<16x96xf32> to vector<16x16xf32>
    %199 = vector.shape_cast %198 : vector<16x16xf32> to vector<2x8x16xf32>
    %200 = vector.extract_strided_slice %177 {offsets = [0, 48], sizes = [16, 16], strides = [1, 1]} : vector<16x96xf32> to vector<16x16xf32>
    %201 = vector.shape_cast %200 : vector<16x16xf32> to vector<2x8x16xf32>
    %202 = vector.extract_strided_slice %177 {offsets = [0, 80], sizes = [16, 16], strides = [1, 1]} : vector<16x96xf32> to vector<16x16xf32>
    %203 = vector.shape_cast %202 : vector<16x16xf32> to vector<2x8x16xf32>
    "tpu.trace_start"() <{level = 10 : i32, message = "bqd,bkd->bqk"}> : () -> ()
    %cst_88 = arith.constant dense<0.000000e+00> : vector<2x8x8xf32>
    %204 = tpu.matmul %199, %201, %cst_88 {dimension_numbers = #tpu.dot_dimension_numbers<[2], [2], [1], [1], [0, 0, 0, 1, 1, 1], [0], [0]>} : vector<2x8x16xf32>, vector<2x8x16xf32>, vector<2x8x8xf32> -> vector<2x8x8xf32>
    "tpu.trace_stop"() : () -> ()
    %cst_89 = arith.constant 2.500000e-01 : f32
    %205 = vector.broadcast %cst_89 : f32 to vector<2x8x8xf32>
    %206 = arith.mulf %204, %205 : vector<2x8x8xf32>
    %cst_90 = arith.constant dense<0xFF800000> : vector<2x8xf32>
    %207 = vector.multi_reduction <maximumf>, %206, %cst_90 [2] : vector<2x8x8xf32> to vector<2x8xf32>
    %208 = vector.shape_cast %207 : vector<2x8xf32> to vector<2x8x1xf32>
    %209 = vector.broadcast %208 : vector<2x8x1xf32> to vector<2x8x8xf32>
    %210 = arith.subf %206, %209 : vector<2x8x8xf32>
    %211 = math.exp %210 : vector<2x8x8xf32>
    %cst_91 = arith.constant dense<0.000000e+00> : vector<2x8xf32>
    %212 = vector.multi_reduction <add>, %211, %cst_91 [2] : vector<2x8x8xf32> to vector<2x8xf32>
    %213 = vector.shape_cast %212 : vector<2x8xf32> to vector<2x8x1xf32>
    %214 = vector.broadcast %213 : vector<2x8x1xf32> to vector<2x8x8xf32>
    %215 = arith.divf %211, %214 : vector<2x8x8xf32>
    "tpu.trace_start"() <{level = 10 : i32, message = "bqk,bkd->bqd"}> : () -> ()
    %cst_92 = arith.constant dense<0.000000e+00> : vector<2x8x16xf32>
    %216 = tpu.matmul %215, %203, %cst_92 {dimension_numbers = #tpu.dot_dimension_numbers<[2], [1], [1], [2], [0, 0, 0, 1, 1, 2], [0], [0]>} : vector<2x8x8xf32>, vector<2x8x16xf32>, vector<2x8x16xf32> -> vector<2x8x16xf32>
    "tpu.trace_stop"() : () -> ()
    %217 = vector.shape_cast %216 : vector<2x8x16xf32> to vector<16x16xf32>
    %218 = tpu.concatenate %197, %217 in 1 : vector<16x16xf32>, vector<16x16xf32> -> vector<16x32xf32>
    %c1_93 = arith.constant 1 : index
    %c0_94 = arith.constant 0 : index
    %c0_95 = arith.constant 0 : index
    %219 = vector.load %arg7[%c1_93, %c0_94, %c0_95] : memref<2x32x32xf32, #tpu.memory_space<vmem>>, vector<1x32x32xf32>
    %220 = vector.shape_cast %219 : vector<1x32x32xf32> to vector<32x32xf32>
    %cst_96 = arith.constant dense<0.000000e+00> : vector<16x32xf32>
    %221 = tpu.matmul %218, %220, %cst_96 {dimension_numbers = #tpu.dot_dimension_numbers<[1], [0], [0], [1], [0, 0, 1, 1], [], []>} : vector<16x32xf32>, vector<32x32xf32>, vector<16x32xf32> -> vector<16x32xf32>
    %c1_97 = arith.constant 1 : index
    %c0_98 = arith.constant 0 : index
    %c0_99 = arith.constant 0 : index
    %222 = vector.load %arg8[%c1_97, %c0_98, %c0_99] : memref<2x1x32xf32, #tpu.memory_space<vmem>>, vector<1x1x32xf32>
    %223 = vector.shape_cast %222 : vector<1x1x32xf32> to vector<1x32xf32>
    %224 = vector.broadcast %223 : vector<1x32xf32> to vector<16x32xf32>
    %225 = arith.addf %221, %224 : vector<16x32xf32>
    %226 = arith.addf %225, %170 : vector<16x32xf32>
    %c1_100 = arith.constant 1 : index
    %c0_101 = arith.constant 0 : index
    %c0_102 = arith.constant 0 : index
    %227 = vector.load %arg9[%c1_100, %c0_101, %c0_102] : memref<2x1x32xf32, #tpu.memory_space<vmem>>, vector<1x1x32xf32>
    %228 = vector.shape_cast %227 : vector<1x1x32xf32> to vector<1x32xf32>
    %c1_103 = arith.constant 1 : index
    %c0_104 = arith.constant 0 : index
    %c0_105 = arith.constant 0 : index
    %229 = vector.load %arg10[%c1_103, %c0_104, %c0_105] : memref<2x1x32xf32, #tpu.memory_space<vmem>>, vector<1x1x32xf32>
    %230 = vector.shape_cast %229 : vector<1x1x32xf32> to vector<1x32xf32>
    %cst_106 = arith.constant dense<0.000000e+00> : vector<16xf32>
    %231 = vector.multi_reduction <add>, %226, %cst_106 [1] : vector<16x32xf32> to vector<16xf32>
    %232 = vector.shape_cast %231 : vector<16xf32> to vector<16x1xf32>
    %cst_107 = arith.constant 3.200000e+01 : f32
    %233 = vector.broadcast %cst_107 : f32 to vector<16x1xf32>
    %234 = arith.divf %232, %233 : vector<16x1xf32>
    %235 = vector.broadcast %234 : vector<16x1xf32> to vector<16x32xf32>
    %236 = arith.subf %226, %235 : vector<16x32xf32>
    %237 = vector.broadcast %234 : vector<16x1xf32> to vector<16x32xf32>
    %238 = arith.subf %226, %237 : vector<16x32xf32>
    %239 = arith.mulf %236, %238 : vector<16x32xf32>
    %cst_108 = arith.constant dense<0.000000e+00> : vector<16xf32>
    %240 = vector.multi_reduction <add>, %239, %cst_108 [1] : vector<16x32xf32> to vector<16xf32>
    %241 = vector.shape_cast %240 : vector<16xf32> to vector<16x1xf32>
    %cst_109 = arith.constant 3.200000e+01 : f32
    %242 = vector.broadcast %cst_109 : f32 to vector<16x1xf32>
    %243 = arith.divf %241, %242 : vector<16x1xf32>
    %244 = vector.broadcast %234 : vector<16x1xf32> to vector<16x32xf32>
    %245 = arith.subf %226, %244 : vector<16x32xf32>
    %cst_110 = arith.constant 9.99999996E-13 : f32
    %246 = vector.broadcast %cst_110 : f32 to vector<16x1xf32>
    %247 = arith.addf %243, %246 : vector<16x1xf32>
    %248 = math.rsqrt %247 : vector<16x1xf32>
    %249 = vector.broadcast %248 : vector<16x1xf32> to vector<16x32xf32>
    %250 = arith.mulf %245, %249 : vector<16x32xf32>
    %251 = vector.broadcast %228 : vector<1x32xf32> to vector<16x32xf32>
    %252 = arith.mulf %250, %251 : vector<16x32xf32>
    %253 = vector.broadcast %230 : vector<1x32xf32> to vector<16x32xf32>
    %254 = arith.addf %252, %253 : vector<16x32xf32>
    %255 = vector.extract_strided_slice %254 {offsets = [0, 0], sizes = [1, 32], strides = [1, 1]} : vector<16x32xf32> to vector<1x32xf32>
    %256 = vector.extract_strided_slice %254 {offsets = [8, 0], sizes = [1, 32], strides = [1, 1]} : vector<16x32xf32> to vector<1x32xf32>
    %257 = tpu.concatenate %255, %256 in 0 : vector<1x32xf32>, vector<1x32xf32> -> vector<2x32xf32>
    %c1_111 = arith.constant 1 : index
    %c0_112 = arith.constant 0 : index
    %c0_113 = arith.constant 0 : index
    %258 = vector.load %arg11[%c1_111, %c0_112, %c0_113] : memref<2x32x64xf32, #tpu.memory_space<vmem>>, vector<1x32x64xf32>
    %259 = vector.shape_cast %258 : vector<1x32x64xf32> to vector<32x64xf32>
    %cst_114 = arith.constant dense<0.000000e+00> : vector<2x64xf32>
    %260 = tpu.matmul %257, %259, %cst_114 {dimension_numbers = #tpu.dot_dimension_numbers<[1], [0], [0], [1], [0, 0, 1, 1], [], []>} : vector<2x32xf32>, vector<32x64xf32>, vector<2x64xf32> -> vector<2x64xf32>
    %c1_115 = arith.constant 1 : index
    %c0_116 = arith.constant 0 : index
    %c0_117 = arith.constant 0 : index
    %261 = vector.load %arg12[%c1_115, %c0_116, %c0_117] : memref<2x1x64xf32, #tpu.memory_space<vmem>>, vector<1x1x64xf32>
    %262 = vector.shape_cast %261 : vector<1x1x64xf32> to vector<1x64xf32>
    %263 = vector.broadcast %262 : vector<1x64xf32> to vector<2x64xf32>
    %264 = arith.addf %260, %263 : vector<2x64xf32>
    %cst_118 = arith.constant 5.000000e-01 : f32
    %265 = vector.broadcast %cst_118 : f32 to vector<2x64xf32>
    %266 = arith.mulf %265, %264 : vector<2x64xf32>
    %cst_119 = arith.constant 0.707106769 : f32
    %267 = vector.broadcast %cst_119 : f32 to vector<2x64xf32>
    %268 = arith.mulf %264, %267 : vector<2x64xf32>
    %269 = math.erf %268 : vector<2x64xf32>
    %cst_120 = arith.constant 1.000000e+00 : f32
    %270 = vector.broadcast %cst_120 : f32 to vector<2x64xf32>
    %271 = arith.addf %270, %269 : vector<2x64xf32>
    %272 = arith.mulf %266, %271 : vector<2x64xf32>
    %c1_121 = arith.constant 1 : index
    %c0_122 = arith.constant 0 : index
    %c0_123 = arith.constant 0 : index
    %273 = vector.load %arg13[%c1_121, %c0_122, %c0_123] : memref<2x64x32xf32, #tpu.memory_space<vmem>>, vector<1x64x32xf32>
    %274 = vector.shape_cast %273 : vector<1x64x32xf32> to vector<64x32xf32>
    %cst_124 = arith.constant dense<0.000000e+00> : vector<2x32xf32>
    %275 = tpu.matmul %272, %274, %cst_124 {dimension_numbers = #tpu.dot_dimension_numbers<[1], [0], [0], [1], [0, 0, 1, 1], [], []>} : vector<2x64xf32>, vector<64x32xf32>, vector<2x32xf32> -> vector<2x32xf32>
    %c1_125 = arith.constant 1 : index
    %c0_126 = arith.constant 0 : index
    %c0_127 = arith.constant 0 : index
    %276 = vector.load %arg14[%c1_125, %c0_126, %c0_127] : memref<2x1x32xf32, #tpu.memory_space<vmem>>, vector<1x1x32xf32>
    %277 = vector.shape_cast %276 : vector<1x1x32xf32> to vector<1x32xf32>
    %278 = vector.broadcast %277 : vector<1x32xf32> to vector<2x32xf32>
    %279 = arith.addf %275, %278 : vector<2x32xf32>
    %280 = arith.addf %279, %257 : vector<2x32xf32>
    %c1_128 = arith.constant 1 : index
    %c0_129 = arith.constant 0 : index
    %c0_130 = arith.constant 0 : index
    %281 = vector.load %arg15[%c1_128, %c0_129, %c0_130] : memref<2x1x32xf32, #tpu.memory_space<vmem>>, vector<1x1x32xf32>
    %282 = vector.shape_cast %281 : vector<1x1x32xf32> to vector<1x32xf32>
    %c1_131 = arith.constant 1 : index
    %c0_132 = arith.constant 0 : index
    %c0_133 = arith.constant 0 : index
    %283 = vector.load %arg16[%c1_131, %c0_132, %c0_133] : memref<2x1x32xf32, #tpu.memory_space<vmem>>, vector<1x1x32xf32>
    %284 = vector.shape_cast %283 : vector<1x1x32xf32> to vector<1x32xf32>
    %cst_134 = arith.constant dense<0.000000e+00> : vector<2xf32>
    %285 = vector.multi_reduction <add>, %280, %cst_134 [1] : vector<2x32xf32> to vector<2xf32>
    %286 = vector.shape_cast %285 : vector<2xf32> to vector<2x1xf32>
    %cst_135 = arith.constant 3.200000e+01 : f32
    %287 = vector.broadcast %cst_135 : f32 to vector<2x1xf32>
    %288 = arith.divf %286, %287 : vector<2x1xf32>
    %289 = vector.broadcast %288 : vector<2x1xf32> to vector<2x32xf32>
    %290 = arith.subf %280, %289 : vector<2x32xf32>
    %291 = vector.broadcast %288 : vector<2x1xf32> to vector<2x32xf32>
    %292 = arith.subf %280, %291 : vector<2x32xf32>
    %293 = arith.mulf %290, %292 : vector<2x32xf32>
    %cst_136 = arith.constant dense<0.000000e+00> : vector<2xf32>
    %294 = vector.multi_reduction <add>, %293, %cst_136 [1] : vector<2x32xf32> to vector<2xf32>
    %295 = vector.shape_cast %294 : vector<2xf32> to vector<2x1xf32>
    %cst_137 = arith.constant 3.200000e+01 : f32
    %296 = vector.broadcast %cst_137 : f32 to vector<2x1xf32>
    %297 = arith.divf %295, %296 : vector<2x1xf32>
    %298 = vector.broadcast %288 : vector<2x1xf32> to vector<2x32xf32>
    %299 = arith.subf %280, %298 : vector<2x32xf32>
    %cst_138 = arith.constant 9.99999996E-13 : f32
    %300 = vector.broadcast %cst_138 : f32 to vector<2x1xf32>
    %301 = arith.addf %297, %300 : vector<2x1xf32>
    %302 = math.rsqrt %301 : vector<2x1xf32>
    %303 = vector.broadcast %302 : vector<2x1xf32> to vector<2x32xf32>
    %304 = arith.mulf %299, %303 : vector<2x32xf32>
    %305 = vector.broadcast %282 : vector<1x32xf32> to vector<2x32xf32>
    %306 = arith.mulf %304, %305 : vector<2x32xf32>
    %307 = vector.broadcast %284 : vector<1x32xf32> to vector<2x32xf32>
    %308 = arith.addf %306, %307 : vector<2x32xf32>
    %c0_139 = arith.constant 0 : index
    %c0_140 = arith.constant 0 : index
    %309 = vector.load %arg17[%c0_139, %c0_140] : memref<32x16xf32, #tpu.memory_space<vmem>>, vector<32x16xf32>
    %cst_141 = arith.constant dense<0.000000e+00> : vector<2x16xf32>
    %310 = tpu.matmul %308, %309, %cst_141 {dimension_numbers = #tpu.dot_dimension_numbers<[1], [0], [0], [1], [0, 0, 1, 1], [], []>} : vector<2x32xf32>, vector<32x16xf32>, vector<2x16xf32> -> vector<2x16xf32>
    %c0_142 = arith.constant 0 : index
    %c0_143 = arith.constant 0 : index
    %311 = vector.load %arg18[%c0_142, %c0_143] : memref<1x16xf32, #tpu.memory_space<vmem>>, vector<1x16xf32>
    %312 = vector.broadcast %311 : vector<1x16xf32> to vector<2x16xf32>
    %313 = arith.addf %310, %312 : vector<2x16xf32>
    %c0_144 = arith.constant 0 : index
    %c0_145 = arith.constant 0 : index
    %314 = vector.load %arg19[%c0_144, %c0_145] : memref<2x16xf32, #tpu.memory_space<vmem>>, vector<2x16xf32>
    tpu.vector_store %arg19[%c0_144, %c0_145], %313 {strides = array<i32>} : memref<2x16xf32, #tpu.memory_space<vmem>>, vector<2x16xf32>,
    return
  }
}

</mosaic_0001>

<bundles_post_ra>
// kernel: text_encoder_forward.1
= control target key start
LH: loop header
LB: loop body
LE: loop exit
PB: predicated region body
PF: predicated region fallthrough
CT: control target
= control target key end

     0   :  { %s3705_s0 = inlined_call_operand.vmem [shape: s32[16,1], index: 0, kind: input, shape index: {}]   ;;  %s3706_s1 = inlined_call_operand.vmem [shape: f32[128,32], index: 1, kind: input, shape index: {}]   ;;  %s3707_s2 = inlined_call_operand.vmem [shape: f32[16,32], index: 2, kind: input, shape index: {}]   ;;  %s3708_s3 = inlined_call_operand.vmem [shape: f32[1,32], index: 3, kind: input, shape index: {}]   ;;  %s3709_s4 = inlined_call_operand.vmem [shape: f32[1,32], index: 4, kind: input, shape index: {}]   ;;  %s3710_s5 = inlined_call_operand.vmem [shape: f32[2,32,96], index: 5, kind: input, shape index: {}]   ;;  %s3711_s6 = inlined_call_operand.vmem [shape: f32[2,1,96], index: 6, kind: input, shape index: {}]   ;;  %s3712_s7 = inlined_call_operand.vmem [shape: f32[2,32,32], index: 7, kind: input, shape index: {}]   ;;  %s3713_s8 = inlined_call_operand.vmem [shape: f32[2,1,32], index: 8, kind: input, shape index: {}]   ;;  %s3714_s9 = inlined_call_operand.vmem [shape: f32[2,1,32], index: 9, kind: input, shape index: {}]   ;;  %s3715_s10 = inlined_call_operand.vmem [shape: f32[2,1,32], index: 10, kind: input, shape index: {}]   ;;  %s3716_s11 = inlined_call_operand.vmem [shape: f32[2,32,64], index: 11, kind: input, shape index: {}]   ;;  %s3717_s12 = inlined_call_operand.vmem [shape: f32[2,1,64], index: 12, kind: input, shape index: {}]   ;;  %s3718_s13 = inlined_call_operand.vmem [shape: f32[2,64,32], index: 13, kind: input, shape index: {}]   ;;  %s3719_s14 = inlined_call_operand.vmem [shape: f32[2,1,32], index: 14, kind: input, shape index: {}]   ;;  %s3720_s15 = inlined_call_operand.vmem [shape: f32[2,1,32], index: 15, kind: input, shape index: {}]   ;;  %s3721_s16 = inlined_call_operand.vmem [shape: f32[2,1,32], index: 16, kind: input, shape index: {}]   ;;  %s3722_s17 = inlined_call_operand.vmem [shape: f32[32,16], index: 17, kind: input, shape index: {}]   ;;  %s3723_s18 = inlined_call_operand.vmem [shape: f32[1,16], index: 18, kind: input, shape index: {}]   ;;  %s3724_s19 = inlined_call_operand.hbm [shape: f32[2,16], index: 19, kind: output, shape index: {}]  }
   0x1   :  { %3729 = sst [smem:[#allocation5_spill]] %s3705_s0 }
   0x2   :  { %3730 = sst [smem:[#allocation6_spill]] %s3706_s1 }
   0x3   :  { %3731 = sst [smem:[#allocation7_spill]] %s3707_s2 }
   0x4   :  { %3732 = sst [smem:[#allocation8_spill]] %s3708_s3 }
   0x5   :  { %3733 = sst [smem:[#allocation9_spill]] %s3719_s14 }
   0x6   :  { %s3734_s20 = sld [smem:[#allocation5_spill]]  ;;  %v3113_v2 = vmov 0  }
   0x7   :  { %s3735_s14 = sld [smem:[#allocation6_spill]]  ;;  %3034 = vset.pattern.permute.xlu0 %v3113_v2 }
   0xc   :  { %v63_v0 = vld [vmem:[%s3734_s20] sm:$0xff]  ;;  %v64_v5 = vld [vmem:[%s3734_s20 + $0x8] sm:$0xff] }
   0xd   :  { %v94_v1 = vld [vmem:[%s3735_s14 + $0x78] sm:$0xff]  ;;  %v93_v3 = vld [vmem:[%s3735_s14 + $0x70] sm:$0xff]  ;;  %68 = vperm.xlu0 %3034, %v63_v0   ;;  %v92_v4 = vld [vmem:[%s3735_s14 + $0x68] sm:$0xff] }
   0xe   :  { %2793 = vmatprep.subr.mxu0 %v94_v1  ;;  %v91_v6 = vld [vmem:[%s3735_s14 + $0x60] sm:$0xff]  ;;  %v90_v7 = vld [vmem:[%s3735_s14 + $0x58] sm:$0xff] }
   0xf   :  { %2794 = vmatpush3.msra.mxu0 %v94_v1 }
  0x10   :  { %2795 = vmatprep.subr.mxu0 %v93_v3 }
  0x11   :  { %2796 = vmatpush3.msra.mxu0 %v93_v3  ;;  %71 = vperm.xlu0 %3034, %v64_v5  }
  0x12   :  { %2797 = vmatprep.subr.mxu0 %v92_v4 }
  0x13   :  { %2798 = vmatpush3.msra.mxu0 %v92_v4 }
  0x14   :  { %24 = vsyncpa [#allocation3], 0  ;;  %2799 = vmatprep.subr.mxu0 %v91_v6  ;;  %v89_v8 = vld [vmem:[%s3735_s14 + $0x50] sm:$0xff]  ;;  %v88_v9 = vld [vmem:[%s3735_s14 + $0x48] sm:$0xff]  ;;  %v65_v19 = vlaneseq  ;;  %v3114_v22 = vmov 1.0   ;;  %s3736_s25 = sld [smem:[#allocation7_spill]] }
  0x15   :  { %2800 = vmatpush3.msra.mxu0 %v91_v6  ;;  %v87_v10 = vld [vmem:[%s3735_s14 + $0x40] sm:$0xff]  ;;  %v86_v11 = vld [vmem:[%s3735_s14 + $0x38] sm:$0xff]  ;;  %v85_v12 = vld [vmem:[%s3735_s14 + $0x30] sm:$0xff]  ;;  %vm174_vm2 = vcmask 261120   ;;  %s3737_s2 = sld [smem:[#allocation8_spill]]  ;;  %v3115_v62 = vmov 0.0  }
  0x16   :  { %2801 = vmatprep.subr.mxu0 %v90_v7  ;;  %v84_v13 = vld [vmem:[%s3735_s14 + $0x28] sm:$0xff]  ;;  %v83_v14 = vld [vmem:[%s3735_s14 + $0x20] sm:$0xff]  ;;  %v82_v15 = vld [vmem:[%s3735_s14 + $0x18] sm:$0xff]  ;;  %v66_v20 = vand.u32 127, %v65_v19  ;;  %vm3116_vm3 = vmmov 0   ;;  %s3117_s3 = smov 96  }
  0x17   :  { %2802 = vmatpush3.msra.mxu0 %v90_v7  ;;  %v81_v16 = vld [vmem:[%s3735_s14 + $0x10] sm:$0xff]  ;;  %v80_v17 = vld [vmem:[%s3735_s14 + $0x8] sm:$0xff]  ;;  %v79_v18 = vld [vmem:[%s3735_s14] sm:$0xff]  ;;  %vm313_vm4 = vcmask 130048   ;;  %vm467_vm5 = vcmask 64512   ;;  %s3118_s14 = smov 64  }
  0x18   :  { %2803 = vmatprep.subr.mxu0 %v89_v8  ;;  %v221_v42 = vld [vmem:[%s3710_s5 + $0x18] sm:$0xff]  ;;  %v220_v43 = vld [vmem:[%s3710_s5 + $0x10] sm:$0xff]  ;;  %v219_v44 = vld [vmem:[%s3710_s5 + $0x8] sm:$0xff]  ;;  %s3119_s26 = smov 80   ;;  %s3120_s27 = smov 112   ;;  %vm1239_vm6 = vcmask 523264  }
  0x19   :  { %2804 = vmatpush3.msra.mxu0 %v89_v8  ;;  %2828 = vmatprep.subr.mxu1 %v221_v42  ;;  %v218_v45 = vld [vmem:[%s3710_s5] sm:$0xff]  ;;  %s3121_s28 = smov 48   ;;  %s3122_s23 = smov 16   ;;  %vm2278_vm7 = vcmask 1040384   ;;  %vm2466_vm8 = vcmask 254976   ;;  %vm2578_vm9 = vcmask 123904  }
  0x1a   :  { %2805 = vmatprep.subr.mxu0 %v88_v9  ;;  %v95_v25 = vld [vmem:[%s3736_s25] sm:$0xff]  ;;  %v96_v26 = vld [vmem:[%s3736_s25 + $0x8] sm:$0xff]  ;;  %2829 = vmatpush3.msra.mxu1 %v221_v42  ;;  %s3123_s30 = smov [#allocation2]  }
  0x1b   :  { %2806 = vmatpush3.msra.mxu0 %v88_v9  ;;  %2830 = vmatprep.subr.mxu1 %v220_v43  ;;  %v2598_v53 = vld [vmem:[%s3737_s2] ss:$0 sm:$0xff]  ;;  %s2586_s20 = sshll.u32 %s3123_s30, 4  ;;  %s2587_s20 = int_to_ptr.vmem [resolvable:$true] %s2586_s20 }
  0x1c   :  { %2807 = vmatprep.subr.mxu0 %v87_v10  ;;  %2831 = vmatpush3.msra.mxu1 %v220_v43  ;;  %v2599_v55 = vld [vmem:[%s3709_s4] ss:$0 sm:$0xff]  ;;  %s3738_s4 = sld [smem:[#allocation9_spill]]  ;;  %p3096_p1 = scmp.lt.s32.totalorder %s2587_s20, %s2587_s20 }
  0x1d   :  { %2808 = vmatpush3.msra.mxu0 %v87_v10  ;;  %2832 = vmatprep.subr.mxu1 %v219_v44  ;;  %v2600_v0 = vld [vmem:[%s3711_s6] ss:$0 sm:$0xff] }
  0x1e   :  { %2809 = vmatprep.subr.mxu0 %v86_v11  ;;  %2833 = vmatpush3.msra.mxu1 %v219_v44 }
  0x1f   :  { %2810 = vmatpush3.msra.mxu0 %v86_v11  ;;  %2834 = vmatprep.subr.mxu1 %v218_v45 }
  0x20   :  { %2811 = vmatprep.subr.mxu0 %v85_v12  ;;  %2835 = vmatpush3.msra.mxu1 %v218_v45 }
  0x21   :  { %2812 = vmatpush3.msra.mxu0 %v85_v12  ;;  %2839 = vmatprep.subr.mxu1 %v3115_v62 }
  0x22   :  { %2813 = vmatprep.subr.mxu0 %v84_v13 }
  0x23   :  { %2814 = vmatpush3.msra.mxu0 %v84_v13 }
  0x24   :  { %2815 = vmatprep.subr.mxu0 %v83_v14 }
  0x25   :  { %2816 = vmatpush3.msra.mxu0 %v83_v14 }
  0x26   :  { %2817 = vmatprep.subr.mxu0 %v82_v15 }
  0x27   :  { %2818 = vmatpush3.msra.mxu0 %v82_v15 }
  0x28   :  { %2819 = vmatprep.subr.mxu0 %v81_v16 }
  0x29   :  { %2820 = vmatpush3.msra.mxu0 %v81_v16 }
  0x2a   :  { %2821 = vmatprep.subr.mxu0 %v80_v17 }
  0x2b   :  { %2822 = vmatpush3.msra.mxu0 %v80_v17 }
  0x2c   :  { %2823 = vmatprep.subr.mxu0 %v79_v18 }
  0x2d   :  { %2824 = vmatpush3.msra.mxu0 %v79_v18 }
  0x88   :  { %v69_v21 = vpop.permute.xlu0 %68 }
  0x89   :  { %vm73_vm0 = vcmp.eq.s32.totalorder %v66_v20, %v69_v21 }
  0x8a   :  { %2825 = vmatprep.mubr.msk.f32.mxu0 %vm73_vm0, %v3114_v22 }
  0x8c   :  { %v72_v23 = vpop.permute.xlu0 %71 }
  0x8d   :  { %vm74_vm1 = vcmp.eq.s32.totalorder %v66_v20, %v72_v23 }
  0x8e   :  { %2826 = vmatmul.mubr.msk.f32.vlgmr.msra.gmra.mxu0 %vm74_vm1, %v3114_v22 }
 0x14e   :  { %v2827_v24 = vpop.f32.mrf.mxu0 }
 0x14f   :  { %v169_v29 = vadd.f32 %v2827_v24, %v96_v26 }
 0x150   :  { %v163_v27 = vpop.f32.mrf.mxu0 }
 0x151   :  { %v164_v28 = vadd.f32 %v163_v27, %v95_v25  ;;  %v178_v31 = vsel %vm174_vm2, %v169_v29, 0.0 }
 0x153   :  { %v175_v30 = vsel %vm174_vm2, %v164_v28, 0.0 }
 0x154   :  { %176 = vadd.xlane.f32.xlu1 %v175_v30 }
 0x158   :  { %179 = vadd.xlane.f32.xlu1 %v178_v31 }
 0x1dd   :  { %v177_v32 = vpop.xlane.xlu1 %176 }
 0x1de   :  { %v182_v33 = vmul.f32 0.03125, %v177_v32 }
 0x1e0   :  { %v184_v34 = vsub.f32 %v164_v28, %v182_v33 }
 0x1e1   :  { %v180_v35 = vpop.xlane.xlu1 %179 }
 0x1e2   :  { %v183_v36 = vmul.f32 0.03125, %v180_v35  ;;  %v186_v37 = vmul.f32 %v184_v34, %v184_v34 }
 0x1e4   :  { %v185_v38 = vsub.f32 %v169_v29, %v183_v36  ;;  %v188_v39 = vsel %vm174_vm2, %v186_v37, 0.0 }
 0x1e5   :  { %189 = vadd.xlane.f32.xlu0 %v188_v39 }
 0x1e6   :  { %v187_v40 = vmul.f32 %v185_v38, %v185_v38 }
 0x1e8   :  { %v191_v41 = vsel %vm174_vm2, %v187_v40, 0.0 }
 0x1e9   :  { %192 = vadd.xlane.f32.xlu1 %v191_v41 }
 0x26e   :  { %v190_v46 = vpop.xlane.xlu0 %189 }
 0x26f   :  { %v194_v47 = vmul.f32 0.03125, %v190_v46 }
 0x271   :  { %v196_v48 = vadd.f32 1e-12, %v194_v47 }
 0x272   :  { %v193_v49 = vpop.xlane.xlu1 %192 }
 0x273   :  { %3035 = vrsqrt.f32 %v196_v48  ;;  %v195_v50 = vmul.f32 0.03125, %v193_v49 }
 0x275   :  { %v197_v51 = vadd.f32 1e-12, %v195_v50 }
 0x277   :  { %3037 = vrsqrt.f32 %v197_v51 }
 0x280   :  { %v3036_v52 = vpop.eup %3035 }
 0x281   :  { %v200_v54 = vmul.f32 %v3036_v52, %v184_v34 }
 0x283   :  { %v208_v56 = vmul.f32 %v2598_v53, %v200_v54 }
 0x284   :  { %v3038_v57 = vpop.eup %3037 }
 0x285   :  { %v201_v58 = vmul.f32 %v3038_v57, %v185_v38  ;;  %v3306_v59 = vadd.f32 %v2599_v55, %v208_v56 }
 0x287   :  { %v209_v60 = vmul.f32 %v2598_v53, %v201_v58  ;;  %2836 = vmatprep.mubr.msk.f32.mxu1 %vm174_vm2, %v3306_v59 }
 0x289   :  { %v3310_v61 = vadd.f32 %v2599_v55, %v209_v60 }
 0x28b   :  { %2837 = vmatmul.mubr.msk.f32.vlgmr.msra.gmra.mxu1 %vm174_vm2, %v3310_v61 }
 0x28c   :  { %2841 = vmatprep.mubr.msk.f32.mxu1 %vm3116_vm3, %v3115_v62 }
 0x34b   :  { %v2838_v63 = vpop.f32.mrf.mxu1 }
 0x34c   :  { %v3324_v3 = vadd.f32 %v2838_v63, %v2600_v0 }
 0x34d   :  { %v301_v1 = vpop.f32.mrf.mxu1 }
 0x34e   :  { %v3320_v2 = vadd.f32 %v2600_v0, %v301_v1 }
 0x350   :  { %311 = vrot.lane.b32.xlu1 %v3320_v2, %s3117_s3 }
 0x354   :  { %389 = vrot.lane.b32.xlu1 %v3324_v3, %s3117_s3 }
 0x3c2   :  { %v312_v4 = vpop.permute.xlu1 %311 }
 0x3c3   :  { %2840 = vmatpush3.xpose.msk.msra.mxu1 %vm313_vm4, %v312_v4 }
 0x3c4   :  { %2844 = vmatprep.subr.mxu1 %v3115_v62 }
 0x3c6   :  { %2842 = vmatmul.mubr.msk.f32.vlgmr.msra.gmra.mxu1 %vm313_vm4, %v3320_v2  ;;  %v390_v5 = vpop.permute.xlu1 %389 }
 0x3c7   :  { %2845 = vmatpush3.xpose.msk.msra.mxu1 %vm313_vm4, %v390_v5  ;;  %2846 = vmatprep.mubr.msk.f32.mxu1 %vm3116_vm3, %v3115_v62 }
 0x3c8   :  { %2849 = vmatprep.subr.mxu1 %v3115_v62 }
 0x3ca   :  { %2847 = vmatmul.mubr.msk.f32.vlgmr.msra.gmra.mxu1 %vm313_vm4, %v3324_v3 }
 0x3cb   :  { %2851 = vmatprep.mubr.msk.f32.mxu1 %vm3116_vm3, %v3115_v62 }
 0x486   :  { %v384_v6 = vpop.f32.mrf.mxu1 }
 0x487   :  { %v465_v7 = vmul.f32 0.25, %v384_v6  ;;  %v986_v6 = vld [vmem:[%s3712_s7 + $0x10] sm:$0xff] }
 0x488   :  { %v2843_v8 = vpop.f32.mrf.mxu1 }
 0x489   :  { %v468_v9 = vsel %vm467_vm5, %v465_v7, -inf  ;;  %v984_v8 = vld [vmem:[%s3712_s7] sm:$0xff] }
 0x48a   :  { %469 = vmax.xlane.f32.xlu1 %v468_v9  ;;  %v461_v10 = vpop.f32.mrf.mxu1 }
 0x48b   :  { %v466_v11 = vmul.f32 0.25, %v461_v10 }
 0x48c   :  { %v2848_v12 = vpop.f32.mrf.mxu1 }
 0x48d   :  { %v471_v13 = vsel %vm467_vm5, %v466_v11, -inf }
 0x48e   :  { %472 = vmax.xlane.f32.xlu0 %v471_v13 }
 0x49b   :  { %566 = vrot.lane.b32.xlu1 %v3324_v3, %s3118_s14 }
 0x4a4   :  { %490 = vrot.lane.b32.xlu0 %v3320_v2, %s3118_s14 }
 0x4a8   :  { %644 = vrot.lane.b32.xlu0 %v3320_v2, %s3119_s26 }
 0x513   :  { %v470_v14 = vpop.xlane.xlu1 %469 }
 0x514   :  { %v474_v15 = vsub.f32 %v465_v7, %v470_v14  ;;  %v985_v7 = vld [vmem:[%s3712_s7 + $0x8] sm:$0xff] }
 0x516   :  { %v476_v16 = vmul.f32 1.442695, %v474_v15 }
 0x517   :  { %v473_v17 = vpop.xlane.xlu0 %472  ;;  %v567_v31 = vpop.permute.xlu1 %566 }
 0x518   :  { %3039 = vpow2.f32 %v476_v16  ;;  %v475_v18 = vsub.f32 %v466_v11, %v473_v17  ;;  %v2615_v17 = vld [vmem:[%s3713_s8] ss:$0 sm:$0xff] }
 0x51a   :  { %v478_v19 = vmul.f32 1.442695, %v475_v18 }
 0x51b   :  { %v491_v20 = vpop.permute.xlu0 %490 }
 0x51c   :  { %3041 = vpow2.f32 %v478_v19  ;;  %2850 = vmatpush3.msra.mxu1 %v491_v20 }
 0x51d   :  { %2854 = vmatprep.subr.mxu1 %v3115_v62 }
 0x51f   :  { %v645_v25 = vpop.permute.xlu0 %644 }
 0x525   :  { %v3040_v21 = vpop.eup %3039 }
 0x526   :  { %v480_v22 = vsel %vm467_vm5, %v3040_v21, 0.0 }
 0x527   :  { %481 = vadd.xlane.f32.xlu0 %v480_v22 }
 0x529   :  { %v3042_v23 = vpop.eup %3041 }
 0x52a   :  { %v483_v24 = vsel %vm467_vm5, %v3042_v23, 0.0 }
 0x52b   :  { %484 = vadd.xlane.f32.xlu0 %v483_v24 }
 0x541   :  { %642 = vrot.lane.b32.xlu0 %v3320_v2, %s3120_s27 }
 0x545   :  { %722 = vrot.lane.b32.xlu0 %v3324_v3, %s3119_s26 }
 0x549   :  { %720 = vrot.lane.b32.xlu0 %v3324_v3, %s3120_s27 }
 0x5b0   :  { %v482_v26 = vpop.xlane.xlu0 %481 }
 0x5b1   :  { %3043 = vrcp.f32 %v482_v26 }
 0x5b4   :  { %v485_v27 = vpop.xlane.xlu0 %484 }
 0x5b5   :  { %3045 = vrcp.f32 %v485_v27 }
 0x5b8   :  { %v643_v30 = vpop.permute.xlu0 %642 }
 0x5bc   :  { %v723_v34 = vpop.permute.xlu0 %722 }
 0x5be   :  { %v3044_v28 = vpop.eup %3043 }
 0x5bf   :  { %v487_v29 = vmul.f32 %v3044_v28, %v3040_v21 }
 0x5c0   :  { %v721_v35 = vpop.permute.xlu0 %720 }
 0x5c1   :  { %2852 = vmatmul.mubr.msk.f32.vlgmr.msra.gmra.mxu1 %vm467_vm5, %v487_v29 }
 0x5c2   :  { %v3046_v32 = vpop.eup %3045  ;;  %2855 = vmatpush3.msra.mxu1 %v567_v31  ;;  %2856 = vmatprep.mubr.msk.f32.mxu1 %vm3116_vm3, %v3115_v62 }
 0x5c3   :  { %2859 = vmatprep.subr.mxu1 %v3115_v62  ;;  %v489_v33 = vmul.f32 %v3046_v32, %v3042_v23 }
 0x5c5   :  { %2857 = vmatmul.mubr.msk.f32.vlgmr.msra.gmra.mxu1 %vm467_vm5, %v489_v33 }
 0x5c6   :  { %2860 = vmatpush3.xpose.msk.msra.mxu1 %vm313_vm4, %v645_v25  ;;  %2861 = vmatprep.mubr.msk.f32.mxu1 %vm3116_vm3, %v3115_v62 }
 0x5c7   :  { %2864 = vmatprep.subr.mxu1 %v3115_v62 }
 0x5c9   :  { %2862 = vmatmul.mubr.msk.f32.vlgmr.msra.gmra.mxu1 %vm313_vm4, %v643_v30 }
 0x5ca   :  { %2865 = vmatpush3.xpose.msk.msra.mxu1 %vm313_vm4, %v723_v34  ;;  %2866 = vmatprep.mubr.msk.f32.mxu1 %vm3116_vm3, %v3115_v62 }
 0x5cb   :  { %2869 = vmatprep.subr.mxu1 %v3115_v62 }
 0x5cd   :  { %2867 = vmatmul.mubr.msk.f32.vlgmr.msra.gmra.mxu1 %vm313_vm4, %v721_v35  ;;  %v1124_v35 = vld [vmem:[%s3716_s11 + $0x10] sm:$0xff] }
 0x5ce   :  { %2871 = vmatprep.mubr.msk.f32.mxu1 %vm3116_vm3, %v3115_v62 }
 0x681   :  { %v3374_v36 = vpop.f32.mrf.mxu1 }
 0x683   :  { %v2853_v37 = vpop.f32.mrf.mxu1 }
 0x684   :  { %v1122_v37 = vld [vmem:[%s3716_s11] sm:$0xff] }
 0x685   :  { %v3376_v38 = vpop.f32.mrf.mxu1 }
 0x687   :  { %v2858_v39 = vpop.f32.mrf.mxu1 }
 0x689   :  { %v716_v40 = vpop.f32.mrf.mxu1 }
 0x68a   :  { %v798_v41 = vmul.f32 0.25, %v716_v40 }
 0x68b   :  { %v2863_v42 = vpop.f32.mrf.mxu1 }
 0x68c   :  { %v800_v43 = vsel %vm467_vm5, %v798_v41, -inf }
 0x68d   :  { %801 = vmax.xlane.f32.xlu1 %v800_v43  ;;  %v794_v44 = vpop.f32.mrf.mxu1 }
 0x68e   :  { %v799_v45 = vmul.f32 0.25, %v794_v44 }
 0x68f   :  { %v2868_v46 = vpop.f32.mrf.mxu1 }
 0x690   :  { %v803_v47 = vsel %vm467_vm5, %v799_v45, -inf }
 0x691   :  { %804 = vmax.xlane.f32.xlu0 %v803_v47 }
 0x716   :  { %v802_v48 = vpop.xlane.xlu1 %801 }
 0x717   :  { %v806_v49 = vsub.f32 %v798_v41, %v802_v48 }
 0x719   :  { %v808_v50 = vmul.f32 1.442695, %v806_v49 }
 0x71a   :  { %v805_v51 = vpop.xlane.xlu0 %804 }
 0x71b   :  { %3047 = vpow2.f32 %v808_v50  ;;  %v807_v52 = vsub.f32 %v799_v45, %v805_v51  ;;  %v2618_v45 = vld [vmem:[%s3714_s9] ss:$0 sm:$0xff] }
 0x71c   :  { %v2619_v50 = vld [vmem:[%s3715_s10] ss:$0 sm:$0xff] }
 0x71d   :  { %v810_v53 = vmul.f32 1.442695, %v807_v52 }
 0x71f   :  { %3049 = vpow2.f32 %v810_v53 }
 0x728   :  { %v3048_v54 = vpop.eup %3047 }
 0x729   :  { %v812_v55 = vsel %vm467_vm5, %v3048_v54, 0.0 }
 0x72a   :  { %813 = vadd.xlane.f32.xlu0 %v812_v55  ;;  %v1230_v55 = vld [vmem:[%s3718_s13 + $0x30] sm:$0xff] }
 0x72c   :  { %v3050_v56 = vpop.eup %3049 }
 0x72d   :  { %v815_v57 = vsel %vm467_vm5, %v3050_v56, 0.0 }
 0x72e   :  { %816 = vadd.xlane.f32.xlu1 %v815_v57  ;;  %v1228_v57 = vld [vmem:[%s3718_s13 + $0x20] sm:$0xff] }
 0x73f   :  { %898 = vrot.lane.b32.xlu1 %v3324_v3, %s3121_s28 }
 0x740   :  { %822 = vrot.lane.b32.xlu0 %v3320_v2, %s3121_s28  ;;  %v987_v2 = vld [vmem:[%s3712_s7 + $0x18] sm:$0xff] }
 0x741   :  { %2879 = vmatprep.subr.mxu0 %v987_v2 }
 0x742   :  { %2880 = vmatpush3.msra.mxu0 %v987_v2 }
 0x743   :  { %2881 = vmatprep.subr.mxu0 %v986_v6 }
 0x744   :  { %2882 = vmatpush3.msra.mxu0 %v986_v6 }
 0x745   :  { %2883 = vmatprep.subr.mxu0 %v985_v7 }
 0x746   :  { %2884 = vmatpush3.msra.mxu0 %v985_v7 }
 0x747   :  { %2885 = vmatprep.subr.mxu0 %v984_v8 }
 0x748   :  { %2886 = vmatpush3.msra.mxu0 %v984_v8 }
 0x7b3   :  { %v814_v58 = vpop.xlane.xlu0 %813 }
 0x7b4   :  { %3051 = vrcp.f32 %v814_v58  ;;  %v1227_v58 = vld [vmem:[%s3718_s13 + $0x18] sm:$0xff] }
 0x7b7   :  { %v817_v60 = vpop.xlane.xlu1 %816  ;;  %v823_v63 = vpop.permute.xlu0 %822 }
 0x7b8   :  { %3053 = vrcp.f32 %v817_v60  ;;  %2870 = vmatpush3.msra.mxu1 %v823_v63  ;;  %v1226_v60 = vld [vmem:[%s3718_s13 + $0x10] sm:$0xff]  ;;  %v1225_v63 = vld [vmem:[%s3718_s13 + $0x8] sm:$0xff] }
 0x7b9   :  { %2874 = vmatprep.subr.mxu1 %v3115_v62 }
 0x7bb   :  { %v899_v4 = vpop.permute.xlu1 %898 }
 0x7c1   :  { %v3052_v0 = vpop.eup %3051 }
 0x7c2   :  { %v819_v1 = vmul.f32 %v3052_v0, %v3048_v54  ;;  %v1231_v54 = vld [vmem:[%s3718_s13 + $0x38] sm:$0xff]  ;;  %v1224_v0 = vld [vmem:[%s3718_s13] sm:$0xff] }
 0x7c3   :  { %2901 = vmatprep.subr.mxu0 %v1231_v54 }
 0x7c4   :  { %2872 = vmatmul.mubr.msk.f32.vlgmr.msra.gmra.mxu1 %vm467_vm5, %v819_v1  ;;  %v2620_v1 = vld [vmem:[%s3717_s12] ss:$0 sm:$0xff] }
 0x7c5   :  { %v3054_v5 = vpop.eup %3053  ;;  %2875 = vmatpush3.msra.mxu1 %v899_v4  ;;  %2876 = vmatprep.mubr.msk.f32.mxu1 %vm3116_vm3, %v3115_v62 }
 0x7c6   :  { %v821_v3 = vmul.f32 %v3054_v5, %v3050_v56  ;;  %v1229_v56 = vld [vmem:[%s3718_s13 + $0x28] sm:$0xff] }
 0x7c8   :  { %2877 = vmatmul.mubr.msk.f32.vlgmr.msra.gmra.mxu1 %vm467_vm5, %v821_v3 }
 0x884   :  { %v894_v9 = vpop.f32.mrf.mxu1 }
 0x885   :  { %976 = vrot.lane.b32.xlu1 %v894_v9, %s3122_s23 }
 0x886   :  { %v2873_v10 = vpop.f32.mrf.mxu1 }
 0x888   :  { %v970_v11 = vpop.f32.mrf.mxu1 }
 0x889   :  { %978 = vrot.lane.b32.xlu0 %v970_v11, %s3122_s23 }
 0x88a   :  { %v2878_v12 = vpop.f32.mrf.mxu1 }
 0x8f7   :  { %v977_v13 = vpop.permute.xlu1 %976 }
 0x8f8   :  { %v982_v14 = vsel %vm313_vm4, %v3374_v36, %v977_v13  ;;  %v1123_v36 = vld [vmem:[%s3716_s11 + $0x8] sm:$0xff] }
 0x8f9   :  { %2887 = vmatprep.mubr.msk.f32.mxu0 %vm174_vm2, %v982_v14 }
 0x8fb   :  { %v979_v15 = vpop.permute.xlu0 %978 }
 0x8fc   :  { %v983_v16 = vsel %vm313_vm4, %v3376_v38, %v979_v15 }
 0x8fd   :  { %2888 = vmatmul.mubr.msk.f32.vlgmr.msra.gmra.mxu0 %vm174_vm2, %v983_v16  ;;  %v2623_v16 = vld [vmem:[%s3738_s4] ss:$0 sm:$0xff] }
 0x8fe   :  { %2902 = vmatpush3.msra.mxu0 %v1231_v54 }
 0x8ff   :  { %2903 = vmatprep.subr.mxu0 %v1230_v55 }
 0x900   :  { %2904 = vmatpush3.msra.mxu0 %v1230_v55 }
 0x901   :  { %2905 = vmatprep.subr.mxu0 %v1229_v56 }
 0x902   :  { %2906 = vmatpush3.msra.mxu0 %v1229_v56 }
 0x903   :  { %2907 = vmatprep.subr.mxu0 %v1228_v57 }
 0x904   :  { %2908 = vmatpush3.msra.mxu0 %v1228_v57 }
 0x905   :  { %2909 = vmatprep.subr.mxu0 %v1227_v58 }
 0x906   :  { %2910 = vmatpush3.msra.mxu0 %v1227_v58 }
 0x907   :  { %2911 = vmatprep.subr.mxu0 %v1226_v60 }
 0x908   :  { %2912 = vmatpush3.msra.mxu0 %v1226_v60 }
 0x909   :  { %2913 = vmatprep.subr.mxu0 %v1225_v63 }
 0x90a   :  { %2914 = vmatpush3.msra.mxu0 %v1225_v63 }
 0x90b   :  { %2915 = vmatprep.subr.mxu0 %v1224_v0 }
 0x90c   :  { %2916 = vmatpush3.msra.mxu0 %v1224_v0 }
 0x90d   :  { %2941 = vmatprep.subr.mxu0 %v3115_v62 }
 0x9bd   :  { %v2889_v18 = vpop.f32.mrf.mxu0 }
 0x9be   :  { %v1073_v19 = vadd.f32 %v2889_v18, %v2615_v17 }
 0x9bf   :  { %v1067_v20 = vpop.f32.mrf.mxu0 }
 0x9c0   :  { %v1068_v21 = vadd.f32 %v2615_v17, %v1067_v20  ;;  %v1077_v22 = vadd.f32 %v1073_v19, %v3310_v61 }
 0x9c2   :  { %v1083_v23 = vsel %vm174_vm2, %v1077_v22, 0.0  ;;  %v1076_v24 = vadd.f32 %v1068_v21, %v3306_v59  ;;  %v1125_v59 = vld [vmem:[%s3716_s11 + $0x18] sm:$0xff] }
 0x9c3   :  { %1084 = vadd.xlane.f32.xlu0 %v1083_v23  ;;  %2890 = vmatprep.subr.mxu1 %v1125_v59 }
 0x9c4   :  { %v1080_v25 = vsel %vm174_vm2, %v1076_v24, 0.0  ;;  %2891 = vmatpush3.msra.mxu1 %v1125_v59  ;;  %v2630_v59 = vld [vmem:[%s3710_s5 + $0x30] sm:$0xff] }
 0x9c5   :  { %1081 = vadd.xlane.f32.xlu1 %v1080_v25  ;;  %2892 = vmatprep.subr.mxu1 %v1124_v35 }
 0x9c6   :  { %2893 = vmatpush3.msra.mxu1 %v1124_v35  ;;  %v2629_v35 = vld [vmem:[%s3710_s5 + $0x28] sm:$0xff] }
 0x9c7   :  { %2894 = vmatprep.subr.mxu1 %v1123_v36 }
 0x9c8   :  { %2895 = vmatpush3.msra.mxu1 %v1123_v36  ;;  %v2628_v36 = vld [vmem:[%s3710_s5 + $0x20] sm:$0xff] }
 0x9c9   :  { %2896 = vmatprep.subr.mxu1 %v1122_v37 }
 0x9ca   :  { %2897 = vmatpush3.msra.mxu1 %v1122_v37 }
 0xa4c   :  { %v1085_v26 = vpop.xlane.xlu0 %1084 }
 0xa4d   :  { %v1087_v27 = vmul.f32 0.03125, %v1085_v26 }
 0xa4e   :  { %v1082_v28 = vpop.xlane.xlu1 %1081 }
 0xa4f   :  { %v1089_v29 = vsub.f32 %v1077_v22, %v1087_v27  ;;  %v1086_v30 = vmul.f32 0.03125, %v1082_v28 }
 0xa51   :  { %v1088_v31 = vsub.f32 %v1076_v24, %v1086_v30  ;;  %v1091_v32 = vmul.f32 %v1089_v29, %v1089_v29 }
 0xa53   :  { %v1095_v33 = vsel %vm174_vm2, %v1091_v32, 0.0  ;;  %v1090_v34 = vmul.f32 %v1088_v31, %v1088_v31 }
 0xa54   :  { %1096 = vadd.xlane.f32.xlu1 %v1095_v33 }
 0xa55   :  { %v1092_v61 = vsel %vm174_vm2, %v1090_v34, 0.0 }
 0xa56   :  { %1093 = vadd.xlane.f32.xlu0 %v1092_v61  ;;  %v2631_v61 = vld [vmem:[%s3710_s5 + $0x38] sm:$0xff] }
 0xa57   :  { %2920 = vmatprep.subr.mxu1 %v2631_v61 }
 0xadd   :  { %v1097_v38 = vpop.xlane.xlu1 %1096 }
 0xade   :  { %v1099_v39 = vmul.f32 0.03125, %v1097_v38 }
 0xadf   :  { %v1094_v40 = vpop.xlane.xlu0 %1093 }
 0xae0   :  { %v1101_v41 = vadd.f32 1e-12, %v1099_v39  ;;  %v1098_v42 = vmul.f32 0.03125, %v1094_v40 }
 0xae2   :  { %3055 = vrsqrt.f32 %v1101_v41  ;;  %v1100_v43 = vadd.f32 1e-12, %v1098_v42 }
 0xae4   :  { %3057 = vrsqrt.f32 %v1100_v43 }
 0xaef   :  { %v3056_v44 = vpop.eup %3055 }
 0xaf0   :  { %v1105_v46 = vmul.f32 %v3056_v44, %v1089_v29  ;;  %v2626_v44 = vld [vmem:[%s3720_s15] ss:$0 sm:$0xff] }
 0xaf1   :  { %v3058_v47 = vpop.eup %3057 }
 0xaf2   :  { %v1104_v48 = vmul.f32 %v3058_v47, %v1088_v31  ;;  %v1113_v49 = vmul.f32 %v2618_v45, %v1105_v46 }
 0xaf4   :  { %v1112_v51 = vmul.f32 %v2618_v45, %v1104_v48  ;;  %v1121_v53 = vadd.f32 %v2619_v50, %v1113_v49  ;;  %v2627_v49 = vld [vmem:[%s3721_s16] ss:$0 sm:$0xff] }
 0xaf6   :  { %v1120_v52 = vadd.f32 %v2619_v50, %v1112_v51 }
 0xaf8   :  { %2898 = vmatprep.mubr.msk.f32.mxu1 %vm174_vm2, %v1120_v52 }
 0xaf9   :  { %2899 = vmatmul.mubr.msk.f32.vlgmr.msra.gmra.mxu1 %vm174_vm2, %v1121_v53 }
 0xafa   :  { %2921 = vmatpush3.msra.mxu1 %v2631_v61 }
 0xafb   :  { %2922 = vmatprep.subr.mxu1 %v2630_v59 }
 0xafc   :  { %2923 = vmatpush3.msra.mxu1 %v2630_v59 }
 0xafd   :  { %2924 = vmatprep.subr.mxu1 %v2629_v35 }
 0xafe   :  { %2925 = vmatpush3.msra.mxu1 %v2629_v35 }
 0xaff   :  { %2926 = vmatprep.subr.mxu1 %v2628_v36 }
 0xb00   :  { %2927 = vmatpush3.msra.mxu1 %v2628_v36 }
 0xb01   :  { %2931 = vmatprep.subr.mxu1 %v3115_v62 }
 0xbb9   :  { %v2900_v4 = vpop.f32.mrf.mxu1 }
 0xbba   :  { %v1211_v5 = vadd.f32 %v2900_v4, %v2620_v1 }
 0xbbb   :  { %v1205_v3 = vpop.f32.mrf.mxu1 }
 0xbbc   :  { %v1217_v2 = vmul.f32 0.70710677, %v1211_v5  ;;  %v1206_v6 = vadd.f32 %v2620_v1, %v1205_v3  ;;  %v1215_v13 = vmul.f32 0.5, %v1211_v5 }
 0xbbe   :  { %3059 = verf.f32 %v1217_v2  ;;  %v1216_v7 = vmul.f32 0.70710677, %v1206_v6  ;;  %v1214_v11 = vmul.f32 0.5, %v1206_v6 }
 0xbc0   :  { %3061 = verf.f32 %v1216_v7 }
 0xbcb   :  { %v3060_v8 = vpop.eup %3059 }
 0xbcc   :  { %v1221_v10 = vadd.f32 1.0, %v3060_v8 }
 0xbcd   :  { %v3062_v9 = vpop.eup %3061 }
 0xbce   :  { %v1220_v12 = vadd.f32 1.0, %v3062_v9  ;;  %v1223_v15 = vmul.f32 %v1221_v10, %v1215_v13 }
 0xbd0   :  { %v1222_v14 = vmul.f32 %v1220_v12, %v1214_v11 }
 0xbd2   :  { %2917 = vmatprep.mubr.msk.f32.mxu0 %vm1239_vm6, %v1222_v14 }
 0xbd3   :  { %2918 = vmatmul.mubr.msk.f32.vlgmr.msra.gmra.mxu0 %vm1239_vm6, %v1223_v15 }
 0xbd4   :  { %2943 = vmatprep.mubr.msk.f32.mxu0 %vm3116_vm3, %v3115_v62 }
 0xc93   :  { %v2919_v17 = vpop.f32.mrf.mxu0 }
 0xc94   :  { %v1318_v18 = vadd.f32 %v2919_v17, %v2623_v16 }
 0xc95   :  { %v1312_v19 = vpop.f32.mrf.mxu0 }
 0xc96   :  { %v1313_v20 = vadd.f32 %v2623_v16, %v1312_v19  ;;  %v1322_v21 = vadd.f32 %v1318_v18, %v1121_v53  ;;  %v2633_v53 = vld [vmem:[%s3711_s6 + $0x1] ss:$0 sm:$0xff] }
 0xc98   :  { %v1328_v22 = vsel %vm174_vm2, %v1322_v21, 0.0  ;;  %v1321_v23 = vadd.f32 %v1313_v20, %v1120_v52 }
 0xc99   :  { %1329 = vadd.xlane.f32.xlu1 %v1328_v22 }
 0xc9a   :  { %v1325_v24 = vsel %vm174_vm2, %v1321_v23, 0.0 }
 0xc9b   :  { %1326 = vadd.xlane.f32.xlu0 %v1325_v24 }
 0xd22   :  { %v1330_v25 = vpop.xlane.xlu1 %1329 }
 0xd23   :  { %v1332_v26 = vmul.f32 0.03125, %v1330_v25 }
 0xd24   :  { %v1327_v27 = vpop.xlane.xlu0 %1326 }
 0xd25   :  { %v1334_v28 = vsub.f32 %v1322_v21, %v1332_v26  ;;  %v1331_v29 = vmul.f32 0.03125, %v1327_v27 }
 0xd27   :  { %v1333_v30 = vsub.f32 %v1321_v23, %v1331_v29  ;;  %v1336_v31 = vmul.f32 %v1334_v28, %v1334_v28 }
 0xd29   :  { %v1340_v32 = vsel %vm174_vm2, %v1336_v31, 0.0  ;;  %v1335_v33 = vmul.f32 %v1333_v30, %v1333_v30 }
 0xd2a   :  { %1341 = vadd.xlane.f32.xlu1 %v1340_v32 }
 0xd2b   :  { %v1337_v34 = vsel %vm174_vm2, %v1335_v33, 0.0 }
 0xd2c   :  { %1338 = vadd.xlane.f32.xlu0 %v1337_v34 }
 0xdb3   :  { %v1342_v37 = vpop.xlane.xlu1 %1341 }
 0xdb4   :  { %v1344_v38 = vmul.f32 0.03125, %v1342_v37 }
 0xdb5   :  { %v1339_v39 = vpop.xlane.xlu0 %1338 }
 0xdb6   :  { %v1346_v40 = vadd.f32 1e-12, %v1344_v38  ;;  %v1343_v41 = vmul.f32 0.03125, %v1339_v39 }
 0xdb8   :  { %3063 = vrsqrt.f32 %v1346_v40  ;;  %v1345_v42 = vadd.f32 1e-12, %v1343_v41 }
 0xdba   :  { %3065 = vrsqrt.f32 %v1345_v42 }
 0xdc5   :  { %v3064_v43 = vpop.eup %3063 }
 0xdc6   :  { %v1350_v45 = vmul.f32 %v3064_v43, %v1334_v28 }
 0xdc7   :  { %v3066_v46 = vpop.eup %3065 }
 0xdc8   :  { %v1349_v47 = vmul.f32 %v3066_v46, %v1333_v30  ;;  %v1358_v48 = vmul.f32 %v2626_v44, %v1350_v45 }
 0xdca   :  { %v1357_v50 = vmul.f32 %v2626_v44, %v1349_v47  ;;  %v3500_v52 = vadd.f32 %v2627_v49, %v1358_v48 }
 0xdcc   :  { %v3498_v51 = vadd.f32 %v2627_v49, %v1357_v50 }
 0xdce   :  { %2928 = vmatprep.mubr.msk.f32.mxu1 %vm174_vm2, %v3498_v51 }
 0xdcf   :  { %2929 = vmatmul.mubr.msk.f32.vlgmr.msra.gmra.mxu1 %vm174_vm2, %v3500_v52 }
 0xdd0   :  { %2933 = vmatprep.mubr.msk.f32.mxu1 %vm3116_vm3, %v3115_v62 }
 0xe8f   :  { %v2930_v54 = vpop.f32.mrf.mxu1 }
 0xe90   :  { %v3511_v55 = vadd.f32 %v2930_v54, %v2633_v53 }
 0xe91   :  { %v1452_v56 = vpop.f32.mrf.mxu1 }
 0xe92   :  { %v3513_v57 = vadd.f32 %v2633_v53, %v1452_v56  ;;  %1539 = vrot.lane.b32.xlu1 %v3511_v55, %s3117_s3 }
 0xe94   :  { %1462 = vrot.lane.b32.xlu0 %v3513_v57, %s3117_s3 }
 0xf04   :  { %v1540_v60 = vpop.permute.xlu1 %1539 }
 0xf06   :  { %v1463_v58 = vpop.permute.xlu0 %1462 }
 0xf07   :  { %2932 = vmatpush3.xpose.msk.msra.mxu1 %vm313_vm4, %v1463_v58 }
 0xf08   :  { %2936 = vmatprep.subr.mxu1 %v3115_v62 }
 0xf0a   :  { %2934 = vmatmul.mubr.msk.f32.vlgmr.msra.gmra.mxu1 %vm313_vm4, %v3513_v57 }
 0xf0b   :  { %2937 = vmatpush3.xpose.msk.msra.mxu1 %vm313_vm4, %v1540_v60  ;;  %2938 = vmatprep.mubr.msk.f32.mxu1 %vm3116_vm3, %v3115_v62 }
 0xf0c   :  { %2946 = vmatprep.subr.mxu1 %v3115_v62 }
 0xf0e   :  { %2939 = vmatmul.mubr.msk.f32.vlgmr.msra.gmra.mxu1 %vm313_vm4, %v3511_v55 }
 0xf0f   :  { %2948 = vmatprep.mubr.msk.f32.mxu1 %vm3116_vm3, %v3115_v62 }
 0xfca   :  { %v1534_v63 = vpop.f32.mrf.mxu1 }
 0xfcb   :  { %v1615_v0 = vmul.f32 0.25, %v1534_v63 }
 0xfcc   :  { %v2935_v1 = vpop.f32.mrf.mxu1 }
 0xfcd   :  { %v1617_v4 = vsel %vm467_vm5, %v1615_v0, -inf  ;;  %v2648_v1 = vld [vmem:[%s3712_s7 + $0x20] sm:$0xff] }
 0xfce   :  { %1618 = vmax.xlane.f32.xlu1 %v1617_v4  ;;  %v1611_v5 = vpop.f32.mrf.mxu1 }
 0xfcf   :  { %v1616_v3 = vmul.f32 0.25, %v1611_v5 }
 0xfd0   :  { %v2940_v2 = vpop.f32.mrf.mxu1 }
 0xfd1   :  { %v1620_v6 = vsel %vm467_vm5, %v1616_v3, -inf }
 0xfd2   :  { %1621 = vmax.xlane.f32.xlu0 %v1620_v6 }
 0xfdf   :  { %1715 = vrot.lane.b32.xlu1 %v3511_v55, %s3118_s14 }
 0xfe3   :  { %1793 = vrot.lane.b32.xlu1 %v3513_v57, %s3119_s26 }
 0xfe8   :  { %1639 = vrot.lane.b32.xlu0 %v3513_v57, %s3118_s14 }
0x1057   :  { %v1619_v7 = vpop.xlane.xlu1 %1618 }
0x1058   :  { %v1623_v8 = vsub.f32 %v1615_v0, %v1619_v7  ;;  %v2649_v0 = vld [vmem:[%s3712_s7 + $0x28] sm:$0xff] }
0x105a   :  { %v1625_v9 = vmul.f32 1.442695, %v1623_v8 }
0x105b   :  { %v1716_v10 = vpop.permute.xlu1 %1715  ;;  %v1622_v11 = vpop.xlane.xlu0 %1621 }
0x105c   :  { %3067 = vpow2.f32 %v1625_v9  ;;  %v1624_v12 = vsub.f32 %v1616_v3, %v1622_v11  ;;  %2947 = vmatpush3.msra.mxu1 %v1716_v10  ;;  %v2653_v10 = vld [vmem:[%s3713_s8 + $0x1] ss:$0 sm:$0xff] }
0x105d   :  { %2956 = vmatprep.subr.mxu1 %v3115_v62 }
0x105e   :  { %v1627_v13 = vmul.f32 1.442695, %v1624_v12 }
0x105f   :  { %v1640_v14 = vpop.permute.xlu0 %1639  ;;  %v1794_v19 = vpop.permute.xlu1 %1793 }
0x1060   :  { %3069 = vpow2.f32 %v1627_v13  ;;  %2942 = vmatpush3.msra.mxu0 %v1640_v14 }
0x1061   :  { %2951 = vmatprep.subr.mxu0 %v3115_v62 }
0x1069   :  { %v3068_v15 = vpop.eup %3067 }
0x106a   :  { %v1629_v16 = vsel %vm467_vm5, %v3068_v15, 0.0 }
0x106b   :  { %1630 = vadd.xlane.f32.xlu0 %v1629_v16 }
0x106d   :  { %v3070_v17 = vpop.eup %3069 }
0x106e   :  { %v1632_v18 = vsel %vm467_vm5, %v3070_v17, 0.0 }
0x106f   :  { %1633 = vadd.xlane.f32.xlu1 %v1632_v18 }
0x1080   :  { %1791 = vrot.lane.b32.xlu1 %v3513_v57, %s3120_s27 }
0x1081   :  { %1871 = vrot.lane.b32.xlu0 %v3511_v55, %s3119_s26 }
0x1085   :  { %1869 = vrot.lane.b32.xlu0 %v3511_v55, %s3120_s27 }
0x10f4   :  { %v1631_v20 = vpop.xlane.xlu0 %1630 }
0x10f5   :  { %3071 = vrcp.f32 %v1631_v20 }
0x10f8   :  { %v1634_v21 = vpop.xlane.xlu1 %1633  ;;  %v1872_v25 = vpop.permute.xlu0 %1871 }
0x10f9   :  { %3073 = vrcp.f32 %v1634_v21 }
0x10fc   :  { %v1792_v27 = vpop.permute.xlu1 %1791  ;;  %v1870_v28 = vpop.permute.xlu0 %1869 }
0x1102   :  { %v3072_v22 = vpop.eup %3071 }
0x1103   :  { %v1636_v23 = vmul.f32 %v3072_v22, %v3068_v15 }
0x1105   :  { %2944 = vmatmul.mubr.msk.f32.vlgmr.msra.gmra.mxu0 %vm467_vm5, %v1636_v23 }
0x1106   :  { %v3074_v24 = vpop.eup %3073  ;;  %2952 = vmatpush3.xpose.msk.msra.mxu0 %vm313_vm4, %v1794_v19  ;;  %2953 = vmatprep.mubr.msk.f32.mxu0 %vm3116_vm3, %v3115_v62 }
0x1107   :  { %v1638_v26 = vmul.f32 %v3074_v24, %v3070_v17  ;;  %2961 = vmatprep.subr.mxu0 %v3115_v62 }
0x1109   :  { %2949 = vmatmul.mubr.msk.f32.vlgmr.msra.gmra.mxu1 %vm467_vm5, %v1638_v26  ;;  %2954 = vmatmul.mubr.msk.f32.vlgmr.msra.gmra.mxu0 %vm313_vm4, %v1792_v27 }
0x110a   :  { %2957 = vmatpush3.xpose.msk.msra.mxu1 %vm313_vm4, %v1872_v25  ;;  %2958 = vmatprep.mubr.msk.f32.mxu1 %vm3116_vm3, %v3115_v62 }
0x110b   :  { %2966 = vmatprep.subr.mxu1 %v3115_v62  ;;  %2963 = vmatprep.mubr.msk.f32.mxu0 %vm3116_vm3, %v3115_v62 }
0x110d   :  { %2959 = vmatmul.mubr.msk.f32.vlgmr.msra.gmra.mxu1 %vm313_vm4, %v1870_v28  ;;  %v2662_v28 = vld [vmem:[%s3716_s11 + $0x30] sm:$0xff] }
0x110e   :  { %2968 = vmatprep.mubr.msk.f32.mxu1 %vm3116_vm3, %v3115_v62 }
0x11c5   :  { %v3565_v29 = vpop.f32.mrf.mxu0 }
0x11c7   :  { %v2945_v30 = vpop.f32.mrf.mxu0 }
0x11c8   :  { %v2660_v30 = vld [vmem:[%s3716_s11 + $0x20] sm:$0xff] }
0x11c9   :  { %v3567_v31 = vpop.f32.mrf.mxu1  ;;  %v1865_v32 = vpop.f32.mrf.mxu0 }
0x11ca   :  { %v1947_v33 = vmul.f32 0.25, %v1865_v32 }
0x11cb   :  { %v2950_v34 = vpop.f32.mrf.mxu1  ;;  %v2955_v61 = vpop.f32.mrf.mxu0 }
0x11cc   :  { %v1949_v59 = vsel %vm467_vm5, %v1947_v33, -inf }
0x11cd   :  { %1950 = vmax.xlane.f32.xlu1 %v1949_v59  ;;  %v1943_v35 = vpop.f32.mrf.mxu1 }
0x11ce   :  { %v1948_v36 = vmul.f32 0.25, %v1943_v35 }
0x11cf   :  { %v2960_v37 = vpop.f32.mrf.mxu1 }
0x11d0   :  { %v1952_v38 = vsel %vm467_vm5, %v1948_v36, -inf }
0x11d1   :  { %1953 = vmax.xlane.f32.xlu0 %v1952_v38 }
0x1256   :  { %v1951_v39 = vpop.xlane.xlu1 %1950 }
0x1257   :  { %v1955_v40 = vsub.f32 %v1947_v33, %v1951_v39  ;;  %v2659_v39 = vld [vmem:[%s3715_s10 + $0x1] ss:$0 sm:$0xff] }
0x1259   :  { %v1957_v41 = vmul.f32 1.442695, %v1955_v40 }
0x125a   :  { %v1954_v42 = vpop.xlane.xlu0 %1953 }
0x125b   :  { %3075 = vpow2.f32 %v1957_v41  ;;  %v1956_v43 = vsub.f32 %v1948_v36, %v1954_v42  ;;  %v2658_v36 = vld [vmem:[%s3714_s9 + $0x1] ss:$0 sm:$0xff] }
0x125d   :  { %v1959_v44 = vmul.f32 1.442695, %v1956_v43 }
0x125f   :  { %3077 = vpow2.f32 %v1959_v44 }
0x1268   :  { %v3076_v45 = vpop.eup %3075 }
0x1269   :  { %v1961_v46 = vsel %vm467_vm5, %v3076_v45, 0.0 }
0x126a   :  { %1962 = vadd.xlane.f32.xlu0 %v1961_v46 }
0x126c   :  { %v3078_v47 = vpop.eup %3077 }
0x126d   :  { %v1964_v48 = vsel %vm467_vm5, %v3078_v47, 0.0 }
0x126e   :  { %1965 = vadd.xlane.f32.xlu1 %v1964_v48  ;;  %v2673_v48 = vld [vmem:[%s3718_s13 + $0x70] sm:$0xff] }
0x127f   :  { %2047 = vrot.lane.b32.xlu1 %v3511_v55, %s3121_s28  ;;  %v2651_v55 = vld [vmem:[%s3712_s7 + $0x38] sm:$0xff] }
0x1280   :  { %1971 = vrot.lane.b32.xlu0 %v3513_v57, %s3121_s28  ;;  %v2650_v57 = vld [vmem:[%s3712_s7 + $0x30] sm:$0xff] }
0x12f3   :  { %v1963_v49 = vpop.xlane.xlu0 %1962 }
0x12f4   :  { %3079 = vrcp.f32 %v1963_v49  ;;  %v2672_v49 = vld [vmem:[%s3718_s13 + $0x68] sm:$0xff] }
0x12f7   :  { %v1966_v50 = vpop.xlane.xlu1 %1965  ;;  %v1972_v53 = vpop.permute.xlu0 %1971 }
0x12f8   :  { %3081 = vrcp.f32 %v1966_v50  ;;  %2962 = vmatpush3.msra.mxu0 %v1972_v53  ;;  %v2671_v50 = vld [vmem:[%s3718_s13 + $0x60] sm:$0xff]  ;;  %v2670_v53 = vld [vmem:[%s3718_s13 + $0x58] sm:$0xff] }
0x12f9   :  { %2971 = vmatprep.subr.mxu0 %v2651_v55 }
0x12fb   :  { %v2048_v54 = vpop.permute.xlu1 %2047 }
0x12fc   :  { %2967 = vmatpush3.msra.mxu1 %v2048_v54  ;;  %v2669_v54 = vld [vmem:[%s3718_s13 + $0x50] sm:$0xff] }
0x12fd   :  { %2982 = vmatprep.subr.mxu1 %v3115_v62 }
0x1301   :  { %v3080_v56 = vpop.eup %3079 }
0x1302   :  { %v1968_v58 = vmul.f32 %v3080_v56, %v3076_v45  ;;  %v2668_v56 = vld [vmem:[%s3718_s13 + $0x48] sm:$0xff] }
0x1304   :  { %2964 = vmatmul.mubr.msk.f32.vlgmr.msra.gmra.mxu0 %vm467_vm5, %v1968_v58  ;;  %v2667_v58 = vld [vmem:[%s3718_s13 + $0x40] sm:$0xff] }
0x1305   :  { %v3082_v60 = vpop.eup %3081  ;;  %2972 = vmatpush3.msra.mxu0 %v2651_v55 }
0x1306   :  { %v1970_v63 = vmul.f32 %v3082_v60, %v3078_v47  ;;  %2973 = vmatprep.subr.mxu0 %v2650_v57  ;;  %v2674_v47 = vld [vmem:[%s3718_s13 + $0x78] sm:$0xff]  ;;  %v2665_v60 = vld [vmem:[%s3717_s12 + $0x1] ss:$0 sm:$0xff] }
0x1307   :  { %2974 = vmatpush3.msra.mxu0 %v2650_v57 }
0x1308   :  { %2969 = vmatmul.mubr.msk.f32.vlgmr.msra.gmra.mxu1 %vm467_vm5, %v1970_v63  ;;  %2975 = vmatprep.subr.mxu0 %v2649_v0 }
0x1309   :  { %2990 = vmatprep.mubr.msk.f32.mxu1 %vm3116_vm3, %v3115_v62  ;;  %2976 = vmatpush3.msra.mxu0 %v2649_v0 }
0x130a   :  { %2977 = vmatprep.subr.mxu0 %v2648_v1 }
0x130b   :  { %2978 = vmatpush3.msra.mxu0 %v2648_v1 }
0x130c   :  { %2993 = vmatprep.subr.mxu0 %v3115_v62 }
0x13c4   :  { %v2043_v4 = vpop.f32.mrf.mxu0 }
0x13c5   :  { %2125 = vrot.lane.b32.xlu1 %v2043_v4, %s3122_s23 }
0x13c6   :  { %v2965_v5 = vpop.f32.mrf.mxu0 }
0x13c8   :  { %v2119_v3 = vpop.f32.mrf.mxu1 }
0x13c9   :  { %2127 = vrot.lane.b32.xlu0 %v2119_v3, %s3122_s23 }
0x13ca   :  { %v2970_v2 = vpop.f32.mrf.mxu1 }
0x13cb   :  { %v2676_v2 = vld [vmem:[%s3738_s4 + $0x1] ss:$0 sm:$0xff] }
0x1437   :  { %v2126_v6 = vpop.permute.xlu1 %2125 }
0x1438   :  { %v2131_v7 = vsel %vm313_vm4, %v3565_v29, %v2126_v6  ;;  %v2661_v29 = vld [vmem:[%s3716_s11 + $0x28] sm:$0xff] }
0x1439   :  { %2979 = vmatprep.mubr.msk.f32.mxu0 %vm174_vm2, %v2131_v7 }
0x143b   :  { %v2128_v8 = vpop.permute.xlu0 %2127 }
0x143c   :  { %v2132_v9 = vsel %vm313_vm4, %v3567_v31, %v2128_v8 }
0x143d   :  { %2980 = vmatmul.mubr.msk.f32.vlgmr.msra.gmra.mxu0 %vm174_vm2, %v2132_v9 }
0x143e   :  { %3009 = vmatprep.mubr.msk.f32.mxu0 %vm3116_vm3, %v3115_v62  ;;  %2994 = vmatpush3.msra.mxu0 %v2674_v47 }
0x143f   :  { %2995 = vmatprep.subr.mxu0 %v3115_v62 }
0x1440   :  { %2996 = vmatpush3.msra.mxu0 %v2673_v48 }
0x1441   :  { %2997 = vmatprep.subr.mxu0 %v3115_v62 }
0x1442   :  { %2998 = vmatpush3.msra.mxu0 %v2672_v49 }
0x1443   :  { %2999 = vmatprep.subr.mxu0 %v3115_v62 }
0x1444   :  { %3000 = vmatpush3.msra.mxu0 %v2671_v50 }
0x1445   :  { %3001 = vmatprep.subr.mxu0 %v3115_v62 }
0x1446   :  { %3002 = vmatpush3.msra.mxu0 %v2670_v53 }
0x1447   :  { %3003 = vmatprep.subr.mxu0 %v3115_v62 }
0x1448   :  { %3004 = vmatpush3.msra.mxu0 %v2669_v54 }
0x1449   :  { %3005 = vmatprep.subr.mxu0 %v3115_v62 }
0x144a   :  { %3006 = vmatpush3.msra.mxu0 %v2668_v56 }
0x144b   :  { %3007 = vmatprep.subr.mxu0 %v3115_v62 }
0x144c   :  { %3008 = vmatpush3.msra.mxu0 %v2667_v58 }
0x14fd   :  { %v2981_v11 = vpop.f32.mrf.mxu0 }
0x14fe   :  { %v2224_v12 = vadd.f32 %v2981_v11, %v2653_v10 }
0x14ff   :  { %v2218_v13 = vpop.f32.mrf.mxu0 }
0x1500   :  { %v2219_v14 = vadd.f32 %v2653_v10, %v2218_v13  ;;  %v2228_v15 = vadd.f32 %v2224_v12, %v3500_v52 }
0x1502   :  { %v2236_v16 = vsel %vm174_vm2, %v2228_v15, 0.0  ;;  %v2227_v17 = vadd.f32 %v2219_v14, %v3498_v51  ;;  %v2663_v51 = vld [vmem:[%s3716_s11 + $0x38] sm:$0xff] }
0x1503   :  { %2237 = vadd.xlane.f32.xlu1 %v2236_v16  ;;  %2983 = vmatpush3.msra.mxu1 %v2663_v51  ;;  %v2497_v16 = vld [vmem:[%s3722_s17 + $0x18] sm:$0xff] }
0x1504   :  { %v2233_v18 = vsel %vm174_vm2, %v2227_v17, 0.0  ;;  %2984 = vmatprep.subr.mxu1 %v3115_v62 }
0x1505   :  { %2234 = vadd.xlane.f32.xlu0 %v2233_v18  ;;  %2985 = vmatpush3.msra.mxu1 %v2662_v28  ;;  %v2495_v18 = vld [vmem:[%s3722_s17 + $0x8] sm:$0xff] }
0x1506   :  { %2986 = vmatprep.subr.mxu1 %v3115_v62 }
0x1507   :  { %2987 = vmatpush3.msra.mxu1 %v2661_v29 }
0x1508   :  { %2988 = vmatprep.subr.mxu1 %v3115_v62 }
0x1509   :  { %2989 = vmatpush3.msra.mxu1 %v2660_v30 }
0x150a   :  { %3012 = vmatprep.subr.mxu1 %v3115_v62 }
0x158c   :  { %v2238_v19 = vpop.xlane.xlu1 %2237 }
0x158d   :  { %v2240_v20 = vmul.f32 0.03125, %v2238_v19  ;;  %v2494_v19 = vld [vmem:[%s3722_s17] sm:$0xff] }
0x158e   :  { %v2235_v21 = vpop.xlane.xlu0 %2234 }
0x158f   :  { %v2242_v22 = vsub.f32 %v2228_v15, %v2240_v20  ;;  %v2239_v23 = vmul.f32 0.03125, %v2235_v21 }
0x1591   :  { %v2241_v24 = vsub.f32 %v2227_v17, %v2239_v23  ;;  %v2244_v25 = vmul.f32 %v2242_v22, %v2242_v22  ;;  %v2496_v17 = vld [vmem:[%s3722_s17 + $0x10] sm:$0xff] }
0x1593   :  { %v2248_v26 = vsel %vm174_vm2, %v2244_v25, 0.0  ;;  %v2243_v27 = vmul.f32 %v2241_v24, %v2241_v24 }
0x1594   :  { %2249 = vadd.xlane.f32.xlu0 %v2248_v26  ;;  %v2681_v26 = vld [vmem:[%s3721_s16 + $0x1] ss:$0 sm:$0xff] }
0x1595   :  { %v2245_v52 = vsel %vm174_vm2, %v2243_v27, 0.0 }
0x1596   :  { %2246 = vadd.xlane.f32.xlu1 %v2245_v52 }
0x161d   :  { %v2250_v31 = vpop.xlane.xlu0 %2249 }
0x161e   :  { %v2252_v32 = vmul.f32 0.03125, %v2250_v31 }
0x161f   :  { %v2247_v33 = vpop.xlane.xlu1 %2246 }
0x1620   :  { %v2254_v34 = vadd.f32 1e-12, %v2252_v32  ;;  %v2251_v61 = vmul.f32 0.03125, %v2247_v33 }
0x1622   :  { %3083 = vrsqrt.f32 %v2254_v34  ;;  %v2253_v59 = vadd.f32 1e-12, %v2251_v61 }
0x1624   :  { %3085 = vrsqrt.f32 %v2253_v59 }
0x162f   :  { %v3084_v35 = vpop.eup %3083 }
0x1630   :  { %v2258_v37 = vmul.f32 %v3084_v35, %v2242_v22 }
0x1631   :  { %v3086_v38 = vpop.eup %3085 }
0x1632   :  { %v2257_v40 = vmul.f32 %v3086_v38, %v2241_v24  ;;  %v2266_v41 = vmul.f32 %v2658_v36, %v2258_v37  ;;  %v2680_v24 = vld [vmem:[%s3720_s15 + $0x1] ss:$0 sm:$0xff]  ;;  %s3091_s15 = scalar_lea.vmem %s2587_s20, 32 }
0x1633   :  { %p3092_p0 = scmp.ne.s32.totalorder %s2587_s20, %s3091_s15  ;;  %p3097_p2 = scmp.lt.s32.totalorder %s3091_s15, %s3091_s15 }
0x1634   :  { %v2265_v42 = vmul.f32 %v2658_v36, %v2257_v40  ;;  %v2274_v43 = vadd.f32 %v2659_v39, %v2266_v41 }
0x1635   :  { %p3098_p3 = por %p3097_p2, %p3096_p1 }
0x1636   :  { %v2273_v44 = vadd.f32 %v2659_v39, %v2265_v42  ;;  %v2276_v45 = vrot.slane %v2274_v43, 7 }
0x1637   :  { %p3099_p4 = pnand %p3098_p3, %p3092_p0 }
0x1638   :  { %v2279_v46 = vsel %vm2278_vm7, %v2273_v44, %v2276_v45 }
0x1639   :  { %2991 = vmatmul.mubr.msk.f32.vlgmr.msra.gmra.mxu1 %vm174_vm2, %v2279_v46 }
0x163a   :  { %3020 = vmatprep.mubr.msk.f32.mxu1 %vm3116_vm3, %v3115_v62  ;;  %3013 = vmatpush3.msra.mxu1 %v2497_v16 }
0x163b   :  { %3014 = vmatprep.subr.mxu1 %v3115_v62 }
0x163c   :  { %3015 = vmatpush3.msra.mxu1 %v2496_v17 }
0x163d   :  { %3016 = vmatprep.subr.mxu1 %v3115_v62 }
0x163e   :  { %3017 = vmatpush3.msra.mxu1 %v2495_v18 }
0x163f   :  { %3018 = vmatprep.subr.mxu1 %v3115_v62  ;;  %v2682_v62 = vld [vmem:[%s3723_s18] ss:$0 sm:$0xff] }
0x1640   :  { %3019 = vmatpush3.msra.mxu1 %v2494_v19 }
0x16f9   :  { %v2362_v63 = vpop.f32.mrf.mxu1 }
0x16fa   :  { %v2363_v55 = vadd.f32 %v2665_v60, %v2362_v63 }
0x16fb   :  { %v2992_v57 = vpop.f32.mrf.mxu1 }
0x16fc   :  { %v2367_v0 = vmul.f32 0.70710677, %v2363_v55  ;;  %v2366_v4 = vmul.f32 0.5, %v2363_v55 }
0x16fe   :  { %3087 = verf.f32 %v2367_v0 }
0x170b   :  { %v3088_v1 = vpop.eup %3087 }
0x170c   :  { %v2369_v5 = vadd.f32 1.0, %v3088_v1 }
0x170e   :  { %v2370_v3 = vmul.f32 %v2369_v5, %v2366_v4 }
0x1710   :  { %3010 = vmatmul.mubr.msk.f32.vlgmr.msra.gmra.mxu0 %vm1239_vm6, %v2370_v3 }
0x17d0   :  { %v2457_v6 = vpop.f32.mrf.mxu0 }
0x17d1   :  { %v2458_v7 = vadd.f32 %v2676_v2, %v2457_v6 }
0x17d2   :  { %v3011_v8 = vpop.f32.mrf.mxu0 }
0x17d3   :  { %v2461_v9 = vadd.f32 %v2458_v7, %v2279_v46 }
0x17d5   :  { %v2467_v10 = vsel %vm2466_vm8, %v2461_v9, 0.0 }
0x17d6   :  { %2468 = vadd.xlane.f32.xlu0 %v2467_v10 }
0x185f   :  { %v2469_v11 = vpop.xlane.xlu0 %2468 }
0x1860   :  { %v2470_v12 = vmul.f32 0.03125, %v2469_v11 }
0x1862   :  { %v2471_v13 = vsub.f32 %v2461_v9, %v2470_v12 }
0x1864   :  { %v2472_v14 = vmul.f32 %v2471_v13, %v2471_v13 }
0x1866   :  { %v2473_v15 = vsel %vm2466_vm8, %v2472_v14, 0.0 }
0x1867   :  { %2474 = vadd.xlane.f32.xlu1 %v2473_v15 }
0x18f0   :  { %v2475_v20 = vpop.xlane.xlu1 %2474 }
0x18f1   :  { %v2476_v21 = vmul.f32 0.03125, %v2475_v20 }
0x18f3   :  { %v2477_v22 = vadd.f32 1e-12, %v2476_v21 }
0x18f5   :  { %3089 = vrsqrt.f32 %v2477_v22 }
0x1902   :  { %v3090_v23 = vpop.eup %3089 }
0x1903   :  { %v2479_v25 = vmul.f32 %v3090_v23, %v2471_v13 }
0x1905   :  { %v2486_v27 = vmul.f32 %v2680_v24, %v2479_v25 }
0x1907   :  { %v2493_v52 = vadd.f32 %v2681_v26, %v2486_v27 }
0x1909   :  { %3021 = vmatmul.mubr.msk.f32.vlgmr.msra.gmra.mxu1 %vm174_vm2, %v2493_v52 }
0x19c9   :  { %v2574_v51 = vpop.f32.mrf.mxu1 }
0x19ca   :  { %v2575_v28 = vadd.f32 %v2682_v62, %v2574_v51 }
0x19cb   :  { %v3022_v29 = vpop.f32.mrf.mxu1 }
0x19cc   :  { %2579 = vst.msk [vmem:[#allocation2] sm:$0x3] %vm2578_vm9, %v2575_v28 }
0x19cd   :  { %3102 = shalt.err (!%p3099_p4)
}
0x19ce   :  { %2589 = dma.vmem_to_hbm [thread:$0]  %s2587_s20, 32, %s3724_s19, [#allocation3]  }
0x19cf   :  { %3111 = dma.done.wait [#allocation3], 32  }
0x19d0   :  { %3112 = vsyncadd [#allocation3], 4294967264 }
0x19d1   :  { %2593 = vsyncpa [#allocation3], 1 }

</bundles_post_ra>
